<compile_context>
chip_gen: v7x
topology: tpu7x:2x2x1
jax: 0.10.0
libtpu: 0.0.40
codegen_flags: <defaults>
</compile_context>

<pallas_src>
import jax
import jax.numpy as jnp
from jax.experimental import pallas as pl
from jax.experimental.pallas import tpu as pltpu

B = 8                # batch
IN_FEATURES = 1024   # stand-in for 25088
HIDDEN = 512         # stand-in for 4096

TK1 = 256            # K tile of layer 1 (real size: ~1024-2048, bf16, fits v7x VMEM)
TK2 = 128            # K tile of layer 2
K1T = IN_FEATURES // TK1
K2T = HIDDEN // TK2


def _double_head_kernel(x_ref, w1_ref, b1_ref, w2_ref, b2_ref, w3_ref, b3_ref,
                        o_ref, h1a, h1t, h2a, h2t):
    """Phase-gated grid axis: steps [0,K1T) = layer-1 K tiles, rest = layer-2 K tiles."""
    k = pl.program_id(0)
    last = pl.num_programs(0) - 1

    @pl.when(k == 0)
    def _init():
        h1a[...] = jnp.zeros_like(h1a)
        h1t[...] = jnp.zeros_like(h1t)
        h2a[...] = jnp.zeros_like(h2a)
        h2t[...] = jnp.zeros_like(h2t)

    # ---- Phase 1: layer-1 partial sums over K tiles of IN_FEATURES ----------
    @pl.when(k < K1T)
    def _layer1():
        xk = x_ref[...]                                    # (B, TK1) bf16
        h1a[...] += jnp.dot(xk, w1_ref[0], preferred_element_type=jnp.float32)
        h1t[...] += jnp.dot(xk, w1_ref[1], preferred_element_type=jnp.float32)

    # End of phase 1: bias + ReLU (Dropout is identity in eval mode).
    @pl.when(k == K1T - 1)
    def _finish_layer1():
        h1a[...] = jnp.maximum(h1a[...] + b1_ref[0], 0.0)
        h1t[...] = jnp.maximum(h1t[...] + b1_ref[1], 0.0)

    # ---- Phase 2: layer-2 partial sums over K tiles of HIDDEN ---------------
    @pl.when(k >= K1T)
    def _layer2():
        off = pl.multiple_of((k - K1T) * TK2, TK2)
        a_k = h1a[:, pl.ds(off, TK2)].astype(jnp.bfloat16)   # (B, TK2)
        t_k = h1t[:, pl.ds(off, TK2)].astype(jnp.bfloat16)
        h2a[...] += jnp.dot(a_k, w2_ref[0], preferred_element_type=jnp.float32)
        h2t[...] += jnp.dot(t_k, w2_ref[1], preferred_element_type=jnp.float32)

    # ---- Finalize: bias+ReLU, logits via VPU mul + lane reduce, sigmoid -----
    @pl.when(k == last)
    def _finish():
        a2 = jnp.maximum(h2a[...] + b2_ref[0], 0.0)          # (B, HIDDEN) f32
        t2 = jnp.maximum(h2t[...] + b2_ref[1], 0.0)
        # N=1 "matmul" done on VPU/XLU (MXU pass for 1 column is wasted).
        la = jnp.sum(a2 * w3_ref[0], axis=-1, keepdims=True) + b3_ref[0]   # (B,1)
        lt = jnp.sum(t2 * w3_ref[1], axis=-1, keepdims=True) + b3_ref[1]   # (B,1)
        # Assemble the (B, 2) output (col 0 = abnormal, col 1 = tuberculosis)
        # with a lane-broadcast select — single lane-dense store.
        col = jax.lax.broadcasted_iota(jnp.int32, (B, 2), 1)
        logits = jnp.where(col == 0, la, lt)
        o_ref[...] = jax.nn.sigmoid(logits).astype(o_ref.dtype)


def vgg16_double_head(x, params):
    """params: (w1, b1, w2, b2, w3, b3), each with a leading head axis of size 2.
    w1/w2 are bf16 (streamed), biases and w3 are f32. Returns (B, 2) float32."""
    w1, b1, w2, b2, w3, b3 = params
    x = x.astype(jnp.bfloat16)

    flops = 2 * 2 * B * (IN_FEATURES * HIDDEN + HIDDEN * HIDDEN + HIDDEN)
    bytes_accessed = sum(int(a.size) * a.dtype.itemsize
                         for a in (x, w1, b1, w2, b2, w3, b3)) + B * 2 * 4

    return pl.pallas_call(
        _double_head_kernel,
        out_shape=jax.ShapeDtypeStruct((B, 2), jnp.float32),
        grid=(K1T + K2T,),
        in_specs=[
            # x tile streams with w1 during phase 1; pinned (no re-DMA) in phase 2.
            pl.BlockSpec((B, TK1), lambda k: (0, jnp.minimum(k, K1T - 1))),
            # w1: (2, IN, HIDDEN) bf16, K-tiled; pinned during phase 2.
            pl.BlockSpec((2, TK1, HIDDEN), lambda k: (0, jnp.minimum(k, K1T - 1), 0)),
            pl.BlockSpec((2, 1, HIDDEN), lambda k: (0, 0, 0)),
            # w2: (2, HIDDEN, HIDDEN) bf16, K-tiled; block 0 pre-resident in phase 1.
            pl.BlockSpec((2, TK2, HIDDEN), lambda k: (0, jnp.maximum(k - K1T, 0), 0)),
            pl.BlockSpec((2, 1, HIDDEN), lambda k: (0, 0, 0)),
            pl.BlockSpec((2, 1, HIDDEN), lambda k: (0, 0, 0)),
            pl.BlockSpec((2, 1, 1), lambda k: (0, 0, 0)),
        ],
        out_specs=pl.BlockSpec((B, 2), lambda k: (0, 0)),
        scratch_shapes=[pltpu.VMEM((B, HIDDEN), jnp.float32)] * 4,
        compiler_params=pltpu.CompilerParams(
            dimension_semantics=("arbitrary",),     # phased reduction axis
            vmem_limit_bytes=32 * 1024 * 1024,      # sized for v7x scoped VMEM
        ),
        cost_estimate=pl.CostEstimate(
            flops=flops, transcendentals=2 * B, bytes_accessed=bytes_accessed),
    )(x, w1, b1, w2, b2, w3, b3)


def _init_params(key):
    """Deterministic per-head parameter init (stacked along leading head axis)."""
    ks = jax.random.split(key, 6)

    def uni(k, shape, fan_in):
        bound = 1.0 / jnp.sqrt(jnp.float32(fan_in))
        return jax.random.uniform(k, shape, jnp.float32, -bound, bound)

    w1 = uni(ks[0], (2, IN_FEATURES, HIDDEN), IN_FEATURES).astype(jnp.bfloat16)
    b1 = uni(ks[1], (2, 1, HIDDEN), IN_FEATURES)
    w2 = uni(ks[2], (2, HIDDEN, HIDDEN), HIDDEN).astype(jnp.bfloat16)
    b2 = uni(ks[3], (2, 1, HIDDEN), HIDDEN)
    w3 = uni(ks[4], (2, 1, HIDDEN), HIDDEN)      # final Linear weight rows, f32
    b3 = uni(ks[5], (2, 1, 1), HIDDEN)
    return w1, b1, w2, b2, w3, b3


def _reference(x, params):
    """Pure-JAX reference mirroring the kernel's bf16-weight / f32-accum path."""
    w1, b1, w2, b2, w3, b3 = params
    xf = x.astype(jnp.bfloat16).astype(jnp.float32)
    outs = []
    for h in range(2):
        a = jnp.maximum(xf @ w1[h].astype(jnp.float32) + b1[h], 0.0)
        a = a.astype(jnp.bfloat16).astype(jnp.float32)   # kernel feeds bf16 to layer 2
        a = jnp.maximum(a @ w2[h].astype(jnp.float32) + b2[h], 0.0)
        logit = jnp.sum(a * w3[h], axis=-1, keepdims=True) + b3[h]
        outs.append(jax.nn.sigmoid(logit))
    return jnp.concatenate(outs, axis=1).astype(jnp.float32)


if __name__ == "__main__":
    key = jax.random.PRNGKey(0)
    kx, kp = jax.random.split(key)
    x = jax.random.normal(kx, (B, IN_FEATURES), jnp.float32)
    params = _init_params(kp)

    out = jax.block_until_ready(vgg16_double_head(x, params))
    ref = _reference(x, params)

    assert out.shape == (B, 2) and out.dtype == jnp.float32
    assert jnp.allclose(out, ref, atol=1e-4, rtol=1e-4), "mismatch vs reference"
    print("KERNEL_OK")
</pallas_src>

<mosaic_0001>
module attributes {stable_mosaic.version = 11 : i64} {
  func.func @_double_head_kernel(%arg0: i32, %arg1: memref<8x256xbf16, #tpu.memory_space<vmem>>, %arg2: memref<2x256x512xbf16, #tpu.memory_space<vmem>>, %arg3: memref<2x1x512xf32, #tpu.memory_space<vmem>>, %arg4: memref<2x128x512xbf16, #tpu.memory_space<vmem>>, %arg5: memref<2x1x512xf32, #tpu.memory_space<vmem>>, %arg6: memref<2x1x512xf32, #tpu.memory_space<vmem>>, %arg7: memref<2x1x1xf32, #tpu.memory_space<vmem>>, %arg8: memref<8x2xf32, #tpu.memory_space<vmem>>, %arg9: memref<8x512xf32, #tpu.memory_space<vmem>>, %arg10: memref<8x512xf32, #tpu.memory_space<vmem>>, %arg11: memref<8x512xf32, #tpu.memory_space<vmem>>, %arg12: memref<8x512xf32, #tpu.memory_space<vmem>>) attributes {dimension_semantics = [#tpu.dimension_semantics<arbitrary>], iteration_bounds = array<i64: 8>, scalar_prefetch = 0 : i64, scratch_operands = 4 : i64, tpu.core_type = #tpu.core_type<tc>, window_params = [{transform_indices = @transform_0, window_bounds = array<i64: 8, 256>}, {transform_indices = @transform_1, window_bounds = array<i64: 2, 256, 512>}, {pipeline_mode = #tpu.pipeline_mode<synchronous>, transform_indices = @transform_2, window_bounds = array<i64: 2, 1, 512>}, {transform_indices = @transform_3, window_bounds = array<i64: 2, 128, 512>}, {pipeline_mode = #tpu.pipeline_mode<synchronous>, transform_indices = @transform_4, window_bounds = array<i64: 2, 1, 512>}, {pipeline_mode = #tpu.pipeline_mode<synchronous>, transform_indices = @transform_5, window_bounds = array<i64: 2, 1, 512>}, {pipeline_mode = #tpu.pipeline_mode<synchronous>, transform_indices = @transform_6, window_bounds = array<i64: 2, 1, 1>}, {pipeline_mode = #tpu.pipeline_mode<synchronous>, transform_indices = @transform_7, window_bounds = array<i64: 8, 2>}]} {
    %c0_i32 = arith.constant 0 : i32
    %0 = arith.cmpi eq, %arg0, %c0_i32 : i32
    %1 = arith.extui %0 : i1 to i32
    %c0_i32_0 = arith.constant 0 : i32
    %2 = arith.cmpi ne, %1, %c0_i32_0 : i32
    scf.if %2 {
      %cst = arith.constant 0.000000e+00 : f32
      %15 = vector.broadcast %cst : f32 to vector<8x512xf32>
      %c0 = arith.constant 0 : index
      %c0_6 = arith.constant 0 : index
      %16 = vector.load %arg9[%c0, %c0_6] : memref<8x512xf32, #tpu.memory_space<vmem>>, vector<8x512xf32>
      tpu.vector_store %arg9[%c0, %c0_6], %15 {strides = array<i32>} : memref<8x512xf32, #tpu.memory_space<vmem>>, vector<8x512xf32>,
      %cst_7 = arith.constant 0.000000e+00 : f32
      %17 = vector.broadcast %cst_7 : f32 to vector<8x512xf32>
      %c0_8 = arith.constant 0 : index
      %c0_9 = arith.constant 0 : index
      %18 = vector.load %arg10[%c0_8, %c0_9] : memref<8x512xf32, #tpu.memory_space<vmem>>, vector<8x512xf32>
      tpu.vector_store %arg10[%c0_8, %c0_9], %17 {strides = array<i32>} : memref<8x512xf32, #tpu.memory_space<vmem>>, vector<8x512xf32>,
      %cst_10 = arith.constant 0.000000e+00 : f32
      %19 = vector.broadcast %cst_10 : f32 to vector<8x512xf32>
      %c0_11 = arith.constant 0 : index
      %c0_12 = arith.constant 0 : index
      %20 = vector.load %arg11[%c0_11, %c0_12] : memref<8x512xf32, #tpu.memory_space<vmem>>, vector<8x512xf32>
      tpu.vector_store %arg11[%c0_11, %c0_12], %19 {strides = array<i32>} : memref<8x512xf32, #tpu.memory_space<vmem>>, vector<8x512xf32>,
      %cst_13 = arith.constant 0.000000e+00 : f32
      %21 = vector.broadcast %cst_13 : f32 to vector<8x512xf32>
      %c0_14 = arith.constant 0 : index
      %c0_15 = arith.constant 0 : index
      %22 = vector.load %arg12[%c0_14, %c0_15] : memref<8x512xf32, #tpu.memory_space<vmem>>, vector<8x512xf32>
      tpu.vector_store %arg12[%c0_14, %c0_15], %21 {strides = array<i32>} : memref<8x512xf32, #tpu.memory_space<vmem>>, vector<8x512xf32>,
    } else {
    }
    %c4_i32 = arith.constant 4 : i32
    %3 = arith.cmpi slt, %arg0, %c4_i32 : i32
    %4 = arith.extui %3 : i1 to i32
    %c0_i32_1 = arith.constant 0 : i32
    %5 = arith.cmpi ne, %4, %c0_i32_1 : i32
    scf.if %5 {
      %c0 = arith.constant 0 : index
      %c0_6 = arith.constant 0 : index
      %15 = vector.load %arg1[%c0, %c0_6] : memref<8x256xbf16, #tpu.memory_space<vmem>>, vector<8x256xbf16>
      %c0_7 = arith.constant 0 : index
      %c0_8 = arith.constant 0 : index
      %16 = vector.load %arg9[%c0_7, %c0_8] : memref<8x512xf32, #tpu.memory_space<vmem>>, vector<8x512xf32>
      %c0_9 = arith.constant 0 : index
      %c0_10 = arith.constant 0 : index
      %c0_11 = arith.constant 0 : index
      %17 = vector.load %arg2[%c0_9, %c0_10, %c0_11] : memref<2x256x512xbf16, #tpu.memory_space<vmem>>, vector<1x256x512xbf16>
      %18 = vector.shape_cast %17 : vector<1x256x512xbf16> to vector<256x512xbf16>
      %cst = arith.constant dense<0.000000e+00> : vector<8x512xf32>
      %19 = tpu.matmul %15, %18, %cst {dimension_numbers = #tpu.dot_dimension_numbers<[1], [0], [0], [1], [0, 0, 1, 1], [], []>} : vector<8x256xbf16>, vector<256x512xbf16>, vector<8x512xf32> -> vector<8x512xf32>
      %20 = arith.addf %16, %19 : vector<8x512xf32>
      %c0_12 = arith.constant 0 : index
      %c0_13 = arith.constant 0 : index
      %21 = vector.load %arg9[%c0_12, %c0_13] : memref<8x512xf32, #tpu.memory_space<vmem>>, vector<8x512xf32>
      tpu.vector_store %arg9[%c0_12, %c0_13], %20 {strides = array<i32>} : memref<8x512xf32, #tpu.memory_space<vmem>>, vector<8x512xf32>,
      %c0_14 = arith.constant 0 : index
      %c0_15 = arith.constant 0 : index
      %22 = vector.load %arg10[%c0_14, %c0_15] : memref<8x512xf32, #tpu.memory_space<vmem>>, vector<8x512xf32>
      %c1 = arith.constant 1 : index
      %c0_16 = arith.constant 0 : index
      %c0_17 = arith.constant 0 : index
      %23 = vector.load %arg2[%c1, %c0_16, %c0_17] : memref<2x256x512xbf16, #tpu.memory_space<vmem>>, vector<1x256x512xbf16>
      %24 = vector.shape_cast %23 : vector<1x256x512xbf16> to vector<256x512xbf16>
      %cst_18 = arith.constant dense<0.000000e+00> : vector<8x512xf32>
      %25 = tpu.matmul %15, %24, %cst_18 {dimension_numbers = #tpu.dot_dimension_numbers<[1], [0], [0], [1], [0, 0, 1, 1], [], []>} : vector<8x256xbf16>, vector<256x512xbf16>, vector<8x512xf32> -> vector<8x512xf32>
      %26 = arith.addf %22, %25 : vector<8x512xf32>
      %c0_19 = arith.constant 0 : index
      %c0_20 = arith.constant 0 : index
      %27 = vector.load %arg10[%c0_19, %c0_20] : memref<8x512xf32, #tpu.memory_space<vmem>>, vector<8x512xf32>
      tpu.vector_store %arg10[%c0_19, %c0_20], %26 {strides = array<i32>} : memref<8x512xf32, #tpu.memory_space<vmem>>, vector<8x512xf32>,
    } else {
    }
    %c3_i32 = arith.constant 3 : i32
    %6 = arith.cmpi eq, %arg0, %c3_i32 : i32
    %7 = arith.extui %6 : i1 to i32
    %c0_i32_2 = arith.constant 0 : i32
    %8 = arith.cmpi ne, %7, %c0_i32_2 : i32
    scf.if %8 {
      %c0 = arith.constant 0 : index
      %c0_6 = arith.constant 0 : index
      %15 = vector.load %arg9[%c0, %c0_6] : memref<8x512xf32, #tpu.memory_space<vmem>>, vector<8x512xf32>
      %c0_7 = arith.constant 0 : index
      %c0_8 = arith.constant 0 : index
      %c0_9 = arith.constant 0 : index
      %16 = vector.load %arg3[%c0_7, %c0_8, %c0_9] : memref<2x1x512xf32, #tpu.memory_space<vmem>>, vector<1x1x512xf32>
      %17 = vector.shape_cast %16 : vector<1x1x512xf32> to vector<1x512xf32>
      %18 = vector.broadcast %17 : vector<1x512xf32> to vector<8x512xf32>
      %19 = arith.addf %15, %18 : vector<8x512xf32>
      %cst = arith.constant 0.000000e+00 : f32
      %20 = vector.broadcast %cst : f32 to vector<8x512xf32>
      %21 = arith.maximumf %19, %20 : vector<8x512xf32>
      %c0_10 = arith.constant 0 : index
      %c0_11 = arith.constant 0 : index
      %22 = vector.load %arg9[%c0_10, %c0_11] : memref<8x512xf32, #tpu.memory_space<vmem>>, vector<8x512xf32>
      tpu.vector_store %arg9[%c0_10, %c0_11], %21 {strides = array<i32>} : memref<8x512xf32, #tpu.memory_space<vmem>>, vector<8x512xf32>,
      %c0_12 = arith.constant 0 : index
      %c0_13 = arith.constant 0 : index
      %23 = vector.load %arg10[%c0_12, %c0_13] : memref<8x512xf32, #tpu.memory_space<vmem>>, vector<8x512xf32>
      %c1 = arith.constant 1 : index
      %c0_14 = arith.constant 0 : index
      %c0_15 = arith.constant 0 : index
      %24 = vector.load %arg3[%c1, %c0_14, %c0_15] : memref<2x1x512xf32, #tpu.memory_space<vmem>>, vector<1x1x512xf32>
      %25 = vector.shape_cast %24 : vector<1x1x512xf32> to vector<1x512xf32>
      %26 = vector.broadcast %25 : vector<1x512xf32> to vector<8x512xf32>
      %27 = arith.addf %23, %26 : vector<8x512xf32>
      %cst_16 = arith.constant 0.000000e+00 : f32
      %28 = vector.broadcast %cst_16 : f32 to vector<8x512xf32>
      %29 = arith.maximumf %27, %28 : vector<8x512xf32>
      %c0_17 = arith.constant 0 : index
      %c0_18 = arith.constant 0 : index
      %30 = vector.load %arg10[%c0_17, %c0_18] : memref<8x512xf32, #tpu.memory_space<vmem>>, vector<8x512xf32>
      tpu.vector_store %arg10[%c0_17, %c0_18], %29 {strides = array<i32>} : memref<8x512xf32, #tpu.memory_space<vmem>>, vector<8x512xf32>,
    } else {
    }
    %c4_i32_3 = arith.constant 4 : i32
    %9 = arith.cmpi sge, %arg0, %c4_i32_3 : i32
    %10 = arith.extui %9 : i1 to i32
    %c0_i32_4 = arith.constant 0 : i32
    %11 = arith.cmpi ne, %10, %c0_i32_4 : i32
    scf.if %11 {
      %c4_i32_6 = arith.constant 4 : i32
      %15 = arith.subi %arg0, %c4_i32_6 : i32
      %c128_i32 = arith.constant 128 : i32
      %16 = arith.muli %15, %c128_i32 : i32
      %17 = tpu.assume_multiple %16, 128 : i32
      %c0 = arith.constant 0 : index
      %18 = arith.index_cast %17 : i32 to index
      %19 = vector.load %arg9[%c0, %18] : memref<8x512xf32, #tpu.memory_space<vmem>>, vector<8x128xf32>
      %20 = arith.truncf %19 : vector<8x128xf32> to vector<8x128xbf16>
      %c0_7 = arith.constant 0 : index
      %21 = arith.index_cast %17 : i32 to index
      %22 = vector.load %arg10[%c0_7, %21] : memref<8x512xf32, #tpu.memory_space<vmem>>, vector<8x128xf32>
      %23 = arith.truncf %22 : vector<8x128xf32> to vector<8x128xbf16>
      %c0_8 = arith.constant 0 : index
      %c0_9 = arith.constant 0 : index
      %24 = vector.load %arg11[%c0_8, %c0_9] : memref<8x512xf32, #tpu.memory_space<vmem>>, vector<8x512xf32>
      %c0_10 = arith.constant 0 : index
      %c0_11 = arith.constant 0 : index
      %c0_12 = arith.constant 0 : index
      %25 = vector.load %arg4[%c0_10, %c0_11, %c0_12] : memref<2x128x512xbf16, #tpu.memory_space<vmem>>, vector<1x128x512xbf16>
      %26 = vector.shape_cast %25 : vector<1x128x512xbf16> to vector<128x512xbf16>
      %cst = arith.constant dense<0.000000e+00> : vector<8x512xf32>
      %27 = tpu.matmul %20, %26, %cst {dimension_numbers = #tpu.dot_dimension_numbers<[1], [0], [0], [1], [0, 0, 1, 1], [], []>} : vector<8x128xbf16>, vector<128x512xbf16>, vector<8x512xf32> -> vector<8x512xf32>
      %28 = arith.addf %24, %27 : vector<8x512xf32>
      %c0_13 = arith.constant 0 : index
      %c0_14 = arith.constant 0 : index
      %29 = vector.load %arg11[%c0_13, %c0_14] : memref<8x512xf32, #tpu.memory_space<vmem>>, vector<8x512xf32>
      tpu.vector_store %arg11[%c0_13, %c0_14], %28 {strides = array<i32>} : memref<8x512xf32, #tpu.memory_space<vmem>>, vector<8x512xf32>,
      %c0_15 = arith.constant 0 : index
      %c0_16 = arith.constant 0 : index
      %30 = vector.load %arg12[%c0_15, %c0_16] : memref<8x512xf32, #tpu.memory_space<vmem>>, vector<8x512xf32>
      %c1 = arith.constant 1 : index
      %c0_17 = arith.constant 0 : index
      %c0_18 = arith.constant 0 : index
      %31 = vector.load %arg4[%c1, %c0_17, %c0_18] : memref<2x128x512xbf16, #tpu.memory_space<vmem>>, vector<1x128x512xbf16>
      %32 = vector.shape_cast %31 : vector<1x128x512xbf16> to vector<128x512xbf16>
      %cst_19 = arith.constant dense<0.000000e+00> : vector<8x512xf32>
      %33 = tpu.matmul %23, %32, %cst_19 {dimension_numbers = #tpu.dot_dimension_numbers<[1], [0], [0], [1], [0, 0, 1, 1], [], []>} : vector<8x128xbf16>, vector<128x512xbf16>, vector<8x512xf32> -> vector<8x512xf32>
      %34 = arith.addf %30, %33 : vector<8x512xf32>
      %c0_20 = arith.constant 0 : index
      %c0_21 = arith.constant 0 : index
      %35 = vector.load %arg12[%c0_20, %c0_21] : memref<8x512xf32, #tpu.memory_space<vmem>>, vector<8x512xf32>
      tpu.vector_store %arg12[%c0_20, %c0_21], %34 {strides = array<i32>} : memref<8x512xf32, #tpu.memory_space<vmem>>, vector<8x512xf32>,
    } else {
    }
    %c7_i32 = arith.constant 7 : i32
    %12 = arith.cmpi eq, %arg0, %c7_i32 : i32
    %13 = arith.extui %12 : i1 to i32
    %c0_i32_5 = arith.constant 0 : i32
    %14 = arith.cmpi ne, %13, %c0_i32_5 : i32
    scf.if %14 {
      %c0 = arith.constant 0 : index
      %c0_6 = arith.constant 0 : index
      %15 = vector.load %arg11[%c0, %c0_6] : memref<8x512xf32, #tpu.memory_space<vmem>>, vector<8x512xf32>
      %c0_7 = arith.constant 0 : index
      %c0_8 = arith.constant 0 : index
      %c0_9 = arith.constant 0 : index
      %16 = vector.load %arg5[%c0_7, %c0_8, %c0_9] : memref<2x1x512xf32, #tpu.memory_space<vmem>>, vector<1x1x512xf32>
      %17 = vector.shape_cast %16 : vector<1x1x512xf32> to vector<1x512xf32>
      %18 = vector.broadcast %17 : vector<1x512xf32> to vector<8x512xf32>
      %19 = arith.addf %15, %18 : vector<8x512xf32>
      %cst = arith.constant 0.000000e+00 : f32
      %20 = vector.broadcast %cst : f32 to vector<8x512xf32>
      %21 = arith.maximumf %19, %20 : vector<8x512xf32>
      %c0_10 = arith.constant 0 : index
      %c0_11 = arith.constant 0 : index
      %22 = vector.load %arg12[%c0_10, %c0_11] : memref<8x512xf32, #tpu.memory_space<vmem>>, vector<8x512xf32>
      %c1 = arith.constant 1 : index
      %c0_12 = arith.constant 0 : index
      %c0_13 = arith.constant 0 : index
      %23 = vector.load %arg5[%c1, %c0_12, %c0_13] : memref<2x1x512xf32, #tpu.memory_space<vmem>>, vector<1x1x512xf32>
      %24 = vector.shape_cast %23 : vector<1x1x512xf32> to vector<1x512xf32>
      %25 = vector.broadcast %24 : vector<1x512xf32> to vector<8x512xf32>
      %26 = arith.addf %22, %25 : vector<8x512xf32>
      %cst_14 = arith.constant 0.000000e+00 : f32
      %27 = vector.broadcast %cst_14 : f32 to vector<8x512xf32>
      %28 = arith.maximumf %26, %27 : vector<8x512xf32>
      %c0_15 = arith.constant 0 : index
      %c0_16 = arith.constant 0 : index
      %c0_17 = arith.constant 0 : index
      %29 = vector.load %arg6[%c0_15, %c0_16, %c0_17] : memref<2x1x512xf32, #tpu.memory_space<vmem>>, vector<1x1x512xf32>
      %30 = vector.shape_cast %29 : vector<1x1x512xf32> to vector<1x512xf32>
      %31 = vector.broadcast %30 : vector<1x512xf32> to vector<8x512xf32>
      %32 = arith.mulf %21, %31 : vector<8x512xf32>
      %cst_18 = arith.constant dense<0.000000e+00> : vector<8xf32>
      %33 = vector.multi_reduction <add>, %32, %cst_18 [1] : vector<8x512xf32> to vector<8xf32>
      %34 = vector.shape_cast %33 : vector<8xf32> to vector<8x1xf32>
      %c0_19 = arith.constant 0 : index
      %c0_20 = arith.constant 0 : index
      %c0_21 = arith.constant 0 : index
      %35 = vector.load %arg7[%c0_19, %c0_20, %c0_21] : memref<2x1x1xf32, #tpu.memory_space<vmem>>, vector<1x1x1xf32>
      %36 = vector.shape_cast %35 : vector<1x1x1xf32> to vector<1x1xf32>
      %37 = vector.broadcast %36 : vector<1x1xf32> to vector<8x1xf32>
      %38 = arith.addf %34, %37 : vector<8x1xf32>
      %c1_22 = arith.constant 1 : index
      %c0_23 = arith.constant 0 : index
      %c0_24 = arith.constant 0 : index
      %39 = vector.load %arg6[%c1_22, %c0_23, %c0_24] : memref<2x1x512xf32, #tpu.memory_space<vmem>>, vector<1x1x512xf32>
      %40 = vector.shape_cast %39 : vector<1x1x512xf32> to vector<1x512xf32>
      %41 = vector.broadcast %40 : vector<1x512xf32> to vector<8x512xf32>
      %42 = arith.mulf %28, %41 : vector<8x512xf32>
      %cst_25 = arith.constant dense<0.000000e+00> : vector<8xf32>
      %43 = vector.multi_reduction <add>, %42, %cst_25 [1] : vector<8x512xf32> to vector<8xf32>
      %44 = vector.shape_cast %43 : vector<8xf32> to vector<8x1xf32>
      %c1_26 = arith.constant 1 : index
      %c0_27 = arith.constant 0 : index
      %c0_28 = arith.constant 0 : index
      %45 = vector.load %arg7[%c1_26, %c0_27, %c0_28] : memref<2x1x1xf32, #tpu.memory_space<vmem>>, vector<1x1x1xf32>
      %46 = vector.shape_cast %45 : vector<1x1x1xf32> to vector<1x1xf32>
      %47 = vector.broadcast %46 : vector<1x1xf32> to vector<8x1xf32>
      %48 = arith.addf %44, %47 : vector<8x1xf32>
      %49 = tpu.iota {dimensions = array<i32: 1>} : vector<8x2xi32>
      %c0_i32_29 = arith.constant 0 : i32
      %50 = vector.broadcast %c0_i32_29 : i32 to vector<8x2xi32>
      %51 = arith.cmpi eq, %49, %50 : vector<8x2xi32>
      %52 = vector.shape_cast %38 : vector<8x1xf32> to vector<8x1xf32>
      %53 = vector.broadcast %52 : vector<8x1xf32> to vector<8x2xf32>
      %54 = vector.shape_cast %48 : vector<8x1xf32> to vector<8x1xf32>
      %55 = vector.broadcast %54 : vector<8x1xf32> to vector<8x2xf32>
      %56 = arith.select %51, %53, %55 : vector<8x2xi1>, vector<8x2xf32>
      %57 = arith.negf %56 : vector<8x2xf32>
      %58 = math.exp %57 : vector<8x2xf32>
      %cst_30 = arith.constant 1.000000e+00 : f32
      %59 = vector.broadcast %cst_30 : f32 to vector<8x2xf32>
      %60 = arith.addf %59, %58 : vector<8x2xf32>
      %61 = arith.divf %59, %60 : vector<8x2xf32>
      %c0_31 = arith.constant 0 : index
      %c0_32 = arith.constant 0 : index
      %62 = vector.load %arg8[%c0_31, %c0_32] : memref<8x2xf32, #tpu.memory_space<vmem>>, vector<8x2xf32>
      tpu.vector_store %arg8[%c0_31, %c0_32], %61 {strides = array<i32>} : memref<8x2xf32, #tpu.memory_space<vmem>>, vector<8x2xf32>,
    } else {
    }
    return
  }
  func.func @transform_0(%arg0: i32) -> (i32, i32) {
    %c3_i32 = arith.constant 3 : i32
    %0 = arith.minsi %arg0, %c3_i32 : i32
    %c0_i32 = arith.constant 0 : i32
    %c0_i32_0 = arith.constant 0 : i32
    return %c0_i32, %0 : i32, i32
  }
  func.func @transform_1(%arg0: i32) -> (i32, i32, i32) {
    %c3_i32 = arith.constant 3 : i32
    %0 = arith.minsi %arg0, %c3_i32 : i32
    %c0_i32 = arith.constant 0 : i32
    %c0_i32_0 = arith.constant 0 : i32
    %c0_i32_1 = arith.constant 0 : i32
    return %c0_i32, %0, %c0_i32_0 : i32, i32, i32
  }
  func.func @transform_2(%arg0: i32) -> (i32, i32, i32) {
    %c0_i32 = arith.constant 0 : i32
    %c0_i32_0 = arith.constant 0 : i32
    %c0_i32_1 = arith.constant 0 : i32
    %c0_i32_2 = arith.constant 0 : i32
    return %c0_i32, %c0_i32_0, %c0_i32_1 : i32, i32, i32
  }
  func.func @transform_3(%arg0: i32) -> (i32, i32, i32) {
    %c4_i32 = arith.constant 4 : i32
    %0 = arith.subi %arg0, %c4_i32 : i32
    %c0_i32 = arith.constant 0 : i32
    %1 = arith.maxsi %0, %c0_i32 : i32
    %c0_i32_0 = arith.constant 0 : i32
    %c0_i32_1 = arith.constant 0 : i32
    %c0_i32_2 = arith.constant 0 : i32
    return %c0_i32_0, %1, %c0_i32_1 : i32, i32, i32
  }
  func.func @transform_4(%arg0: i32) -> (i32, i32, i32) {
    %c0_i32 = arith.constant 0 : i32
    %c0_i32_0 = arith.constant 0 : i32
    %c0_i32_1 = arith.constant 0 : i32
    %c0_i32_2 = arith.constant 0 : i32
    return %c0_i32, %c0_i32_0, %c0_i32_1 : i32, i32, i32
  }
  func.func @transform_5(%arg0: i32) -> (i32, i32, i32) {
    %c0_i32 = arith.constant 0 : i32
    %c0_i32_0 = arith.constant 0 : i32
    %c0_i32_1 = arith.constant 0 : i32
    %c0_i32_2 = arith.constant 0 : i32
    return %c0_i32, %c0_i32_0, %c0_i32_1 : i32, i32, i32
  }
  func.func @transform_6(%arg0: i32) -> (i32, i32, i32) {
    %c0_i32 = arith.constant 0 : i32
    %c0_i32_0 = arith.constant 0 : i32
    %c0_i32_1 = arith.constant 0 : i32
    %c0_i32_2 = arith.constant 0 : i32
    return %c0_i32, %c0_i32_0, %c0_i32_1 : i32, i32, i32
  }
  func.func @transform_7(%arg0: i32) -> (i32, i32) {
    %c0_i32 = arith.constant 0 : i32
    %c0_i32_0 = arith.constant 0 : i32
    %c0_i32_1 = arith.constant 0 : i32
    return %c0_i32, %c0_i32_0 : i32, i32
  }
}

</mosaic_0001>

<bundles_post_ra>
// kernel: tpu_custom_call.1
= control target key start
LH: loop header
LB: loop body
LE: loop exit
PB: predicated region body
PF: predicated region fallthrough
CT: control target
= control target key end

     0   :  { %s3993_s0 = inlined_call_operand.hbm [shape: bf16[8,1024], index: 0, kind: input, shape index: {}]   ;;  %s3994_s1 = inlined_call_operand.hbm [shape: bf16[2,1024,512], index: 1, kind: input, shape index: {}]   ;;  %s3995_s2 = inlined_call_operand.hbm [shape: f32[2,1,512], index: 2, kind: input, shape index: {}]   ;;  %s3996_s3 = inlined_call_operand.hbm [shape: bf16[2,512,512], index: 3, kind: input, shape index: {}]   ;;  %s3997_s4 = inlined_call_operand.hbm [shape: f32[2,1,512], index: 4, kind: input, shape index: {}]   ;;  %s3998_s5 = inlined_call_operand.hbm [shape: f32[2,1,512], index: 5, kind: input, shape index: {}]   ;;  %s3999_s6 = inlined_call_operand.vmem [shape: f32[2,1,1], index: 6, kind: input, shape index: {}]   ;;  %s4000_s7 = inlined_call_operand.vmem [shape: f32[8,2], index: 7, kind: output, shape index: {}]  }
   0x1   :  { %4015 = sst [smem:[#allocation34_spill]] %s3995_s2 }
   0x2   :  { %4016 = sst [smem:[#allocation35_spill]] %s3999_s6 }
   0x3   :  { %4017 = sst [smem:[#allocation36_spill]] %s4000_s7 }
   0x4   :  { %12 = vsyncpa [#allocation7], 0 }
   0x5   :  { %14 = vsyncpa [#allocation7 + $0x1], 0 }
   0x6   :  { %15 = vsyncpa [#allocation9], 0 }
   0x7   :  { %17 = vsyncpa [#allocation9 + $0x1], 0 }
   0x8   :  { %18 = vsyncpa [#allocation12], 0 }
   0x9   :  { %20 = vsyncpa [#allocation12 + $0x1], 0 }
   0xa   :  { %21 = vsyncpa [#allocation15], 0  ;;  %s3452_s24 = smov 0   ;;  %s3454_s25 = smov 0  }
   0xb   :  { %s3456_s26 = smov 0   ;;  %s3458_s27 = smov 0  }
   0xc   :  { %s3460_s28 = smov 0   ;;  %s3462_s29 = smov 0  }
   0xd   :  { %s3464_s30 = smov 0  }
   0xe LB: > { %4018 = sst [smem:[#allocation28_spill]] %s3370_s25  ;;  %s3486_s8 = sadd.s32 4294967295, %s3390_s30   ;;  %s3390_s30 = sphi %s3464_s30, %s4054_s30   ;;  %s3386_s29 = sphi %s3462_s29, %s4062_s29   ;;  %s3382_s28 = sphi %s3460_s28, %s4061_s28   ;;  %s3378_s27 = sphi %s3458_s27, %s4060_s27   ;;  %s3374_s26 = sphi %s3456_s26, %s4059_s26   ;;  %s3370_s25 = sphi %s3454_s25, %s4058_s25   ;;  %s3366_s24 = sphi %s3452_s24, %s4055_s24  }
   0xf   : > { %4019 = sst [smem:[#allocation29_spill]] %s3486_s8  ;;  %s3489_s9 = sadd.s32 1, %s3390_s30  }
  0x10   : > { %4020 = sst [smem:[#allocation30_spill]] %s3489_s9  ;;  %p31_p0 = scmp.lt.s32.totalorder %s3390_s30, 3 }
  0x11   : > { %p33_p1 = scmp.lt.s32.totalorder %s3489_s9, 3  ;;  %s38_s10 = sadd.s32 1, %s3386_s29 }
  0x12   : > { %p45_p2 = scmp.ne.s32.totalorder %s3386_s29, %s3382_s28  ;;  %p46_p3 = scmp.eq.s32.totalorder %s3390_s30, 0 }
  0x13   : > { %s3497_s11 = scalar_select %p31_p0, %s3390_s30, 3 }
  0x14   : > { %s34_s12 = scalar_select %p33_p1, %s3489_s9, 3 }
  0x15   : > { %p51_p4 = scmp.ne.s32.totalorder %s3382_s28, %s3378_s27  ;;  %p4003_p5 = scmp.eq.s32.totalorder %s3486_s8, 0 }
  0x16   : > { %s35_s13 = ssub.s32 %s3497_s11, %s34_s12  ;;  %p3506_p7 = por %p46_p3, %p45_p2 }
  0x17   : > { %p36_p6 = scmp.eq.s32.totalorder %s35_s13, 0  ;;  %p3512_p8 = por %p4003_p5, %p51_p4 }
  0x18   : > { %s4021_s14 = scalar_select %p3506_p7, 1, 0 }
  0x19   : > { %s4022_s15 = scalar_select %p3512_p8, 1, 0 }
  0x1a   : > { %s2441_s16 = sadd.s32 4294967292, %s3390_s30  ;;  %s2442_s18 = sadd.s32 4294967292, %s3489_s9 }
  0x1b   : > { %s3518_s17 = scalar_select %p36_p6, %s3386_s29, %s38_s10  }
  0x1c   : > { %p113_p9 = scmp.gt.s32.totalorder %s2441_s16, 0  ;;  %p116_p10 = scmp.gt.s32.totalorder %s2442_s18, 0 }
  0x1d   : > { %4023 = sst [smem:[#allocation31_spill]] %s3518_s17  ;;  %s121_s19 = sadd.s32 1, %s3374_s26 }
  0x1e   : > { %s4064_s16 = smov (!%p113_p9, %s2441_s16), 0  ;;  %s4066_s18 = smov (!%p116_p10, %s2442_s18), 0 }
  0x1f   : > { %p128_p11 = scmp.ne.s32.totalorder %s3374_s26, %s3370_s25  ;;  %p134_p12 = scmp.ne.s32.totalorder %s3370_s25, %s3366_s24 }
  0x20   : > { %s118_s20 = ssub.s32 %s4064_s16, %s4066_s18  ;;  %p2443_p13 = scmp.ge.s32.totalorder %s3390_s30, 1 }
  0x21   : > { %p119_p0 = scmp.eq.s32.totalorder %s118_s20, 0  ;;  %p3532_p1 = por %p128_p11, %p46_p3 }
  0x22   : > { %p3538_p2 = por %p134_p12, %p4003_p5  ;;  %p229_p4 = scmp.lt.s32.totalorder %s3390_s30, 9 }
  0x23   : > { %s4024_s21 = scalar_select %p3532_p1, 1, 0 }
  0x24   : > { %s4025_s22 = scalar_select %p3538_p2, 1, 0 }
  0x25   : > { %s3544_s23 = scalar_select %p119_p0, %s3374_s26, %s121_s19  }
  0x26   : > { %4026 = sst [smem:[#allocation32_spill]] %s4025_s22  ;;  %p3546_p6 = pnand %p2443_p13, %p229_p4 }
  0x27   : > { %4027 = sst [smem:[#allocation33_spill]] %s3544_s23  ;;  %s3392_s24 = smov [#allocation10]  }
  0x28   : > { %s4028_s27 = scalar_select %p3546_p6, 1, 0 }
  0x29   : > { %p2813_p10 = pneg %p3546_p6  ;;  %s241_s10 = sshll.u32 %s3392_s24, 4  ;;  %s242_s10 = int_to_ptr.vmem [resolvable:$true] %s241_s10 }
  0x2a   : > { %s3393_s13 = smov [#allocation13]   ;;  %s4030_s2 = sld [smem:[#allocation34_spill]] }
  0x2b   : > { %p3555_p3 = pnand %p2813_p10, %p4003_p5  ;;  %s254_s18 = sshll.u32 %s3393_s13, 4  ;;  %s3559_s18 = int_to_ptr.vmem [resolvable:$true] %s254_s18 }
  0x2d   : > { %p3569_p12 = pneg %p3555_p3 }
  0x30   : > { %s3200_s17 = scalar_lea.hbm %s4030_s2, 128 }
  0x31   : > { %p3201_p11 = scmp.ne.s32.totalorder %s4030_s2, %s3200_s17  ;;  %p3207_p4 = scmp.lt.u32.totalorder %s3200_s17, %s4030_s2 }
  0x33   : > { %p3203_p13 = pnand %p3569_p12, %p3201_p11 }
  0x35   : > { %p3204_p0 = pneg %p3203_p13 }
  0x37   : > { %p3209_p10 = pnand %p3207_p4, %p3204_p0 }
  0x39   : > { %3212 = shalt.err (!%p3209_p10)
}
  0x3a   : > { %s3213_s19 = scalar_lea.vmem %s242_s10, 128  ;;  %p3221_p8 = scmp.lt.s32.totalorder %s242_s10, %s242_s10 }
  0x3b   : > { %p3214_p9 = scmp.ne.s32.totalorder %s242_s10, %s3213_s19  ;;  %p3222_p6 = scmp.lt.s32.totalorder %s3213_s19, %s3213_s19 }
  0x3d   : > { %p3216_p5 = pnand %p3214_p9, %p3569_p12  ;;  %p3223_p1 = por %p3222_p6, %p3221_p8 }
  0x3f   : > { %p3217_p2 = pneg %p3216_p5 }
  0x41   : > { %p3224_p7 = pnand %p3223_p1, %p3217_p2 }
  0x43   : > { %3227 = shalt.err (!%p3224_p7)
}
  0x44   : > { %s3394_s9 = smov 64   ;;  %s3395_s23 = smov 4  }
  0x45   : > { %2816 = dma.hbm_to_vmem [thread:$0]  (!%p3555_p3), %s4030_s2, 128, %s242_s10, [#allocation9], %s3394_s9, %s3394_s9, %s3395_s23  }
  0x46   : > { %s3228_s6 = scalar_lea.hbm %s3997_s4, 128 }
  0x47   : > { %p3229_p5 = scmp.ne.s32.totalorder %s3997_s4, %s3228_s6  ;;  %p3235_p1 = scmp.lt.u32.totalorder %s3228_s6, %s3997_s4 }
  0x49   : > { %p3231_p7 = pnand %p3229_p5, %p3569_p12 }
  0x4b   : > { %p3232_p8 = pneg %p3231_p7 }
  0x4d   : > { %p3237_p2 = pnand %p3235_p1, %p3232_p8 }
  0x4f   : > { %3240 = shalt.err (!%p3237_p2)
}
  0x50   : > { %s3241_s10 = scalar_lea.vmem %s3559_s18, 128  ;;  %p3249_p13 = scmp.lt.s32.totalorder %s3559_s18, %s3559_s18 }
  0x51   : > { %p3242_p6 = scmp.ne.s32.totalorder %s3559_s18, %s3241_s10  ;;  %p3250_p0 = scmp.lt.s32.totalorder %s3241_s10, %s3241_s10 }
  0x53   : > { %p3244_p9 = pnand %p3242_p6, %p3569_p12  ;;  %p3251_p4 = por %p3250_p0, %p3249_p13 }
  0x55   : > { %p3245_p11 = pneg %p3244_p9 }
  0x57   : > { %p3252_p10 = pnand %p3251_p4, %p3245_p11 }
  0x59   : > { %3255 = shalt.err (!%p3252_p10)
}
  0x5a   : > { %2819 = dma.hbm_to_vmem [thread:$0]  (!%p3555_p3), %s3997_s4, 128, %s3559_s18, [#allocation12], %s3394_s9, %s3394_s9, %s3395_s23  }
  0x5b   : > { %s3396_s8 = smov [#allocation14]   ;;  %s3256_s20 = scalar_lea.hbm %s3998_s5, 128 }
  0x5c   : > { %s267_s22 = sshll.u32 %s3396_s8, 4  ;;  %p3257_p5 = scmp.ne.s32.totalorder %s3998_s5, %s3256_s20  ;;  %s268_s22 = int_to_ptr.vmem [resolvable:$true] %s267_s22 }
  0x5d   : > { %p3263_p1 = scmp.lt.u32.totalorder %s3256_s20, %s3998_s5 }
  0x5e   : > { %p3259_p7 = pnand %p3257_p5, %p3569_p12 }
  0x60   : > { %p3260_p8 = pneg %p3259_p7 }
  0x62   : > { %p3265_p2 = pnand %p3263_p1, %p3260_p8 }
  0x64   : > { %3268 = shalt.err (!%p3265_p2)
}
  0x65   : > { %s3269_s18 = scalar_lea.vmem %s268_s22, 128  ;;  %p3277_p13 = scmp.lt.s32.totalorder %s268_s22, %s268_s22 }
  0x66   : > { %p3270_p6 = scmp.ne.s32.totalorder %s268_s22, %s3269_s18  ;;  %p3278_p0 = scmp.lt.s32.totalorder %s3269_s18, %s3269_s18 }
  0x68   : > { %p3272_p9 = pnand %p3270_p6, %p3569_p12  ;;  %p3279_p4 = por %p3278_p0, %p3277_p13 }
  0x6a   : > { %p3273_p11 = pneg %p3272_p9 }
  0x6c   : > { %p3280_p10 = pnand %p3279_p4, %p3273_p11 }
  0x6e   : > { %3283 = shalt.err (!%p3280_p10)
}
  0x6f   : > { %2822 = dma.hbm_to_vmem [thread:$0]  (!%p3555_p3), %s3998_s5, 128, %s268_s22, [#allocation15], %s3394_s9, %s3394_s9, %s3395_s23  }
  0x70   : > { %p2447_p5 = scmp.ge.s32.totalorder %s3390_s30, 8 }
  0x71   : > { %s3637_s24 = sand.u32 (!%p2447_p5), 1, %s3386_s29   ;;  %s2776_s25 = sshll.u32 (!%p2447_p5), %s3497_s11, 7 }
  0x72   : > { %280 = sbr.rel (%p2447_p5) target bundleno = 167 (0xa7), region = 32  ;;  %s2448_s8 = sshll.u32 (!%p2447_p5), %s3637_s24, 3 }
  0x73   : > { %s3644_s17 = scalar_lea.hbm (!%p2447_p5), %s3993_s0, %s2776_s25  ;;  %s288_s9 = scalar_lea.vmem (!%p2447_p5), [#allocation6], %s2448_s8 }
  0x74   : > { %s298_s23 = sshll.u32 (!%p2447_p5), %s288_s9, 4  ;;  %s285_s22 = scalar_lea.sflag (!%p2447_p5), [#allocation7], %s3637_s24  ;;  %s299_s23 = int_to_ptr.vmem [resolvable:$true] %s298_s23 }
  0x75   : > { %s3284_s20 = scalar_lea.hbm (!%p2447_p5), %s3644_s17, 128  ;;  %p4032_p12 = scmp.ne.s32.totalorder (!%p2447_p5), %s4021_s14, 0 }
  0x76   : > { %p3285_p3 = scmp.ne.s32.totalorder (!%p2447_p5), %s3644_s17, %s3284_s20  ;;  %s3288_s10 = scalar_lea.hbm (!%p2447_p5), %s3993_s0, 512 }
  0x77   : > { %p3289_p1 = scmp.lt.u32.totalorder (!%p2447_p5), %s3644_s17, %s3993_s0  ;;  %p3290_p2 = scmp.lt.u32.totalorder (!%p2447_p5), %s3288_s10, %s3284_s20 }
  0x78   : > { %p3286_p7 = pnand (!%p2447_p5), %p3285_p3, %p4032_p12  ;;  %p3292_p9 = scmp.lt.u32.totalorder (!%p2447_p5), %s3284_s20, %s3644_s17 }
  0x79   : > { %p3291_p6 = por %p3290_p2, %p3289_p1 }
  0x7a   : > { %p3287_p8 = pneg %p3286_p7 }
  0x7b   : > { %p3293_p11 = por %p3292_p9, %p3291_p6 }
  0x7d   : > { %p3294_p13 = pnand %p3293_p11, %p3287_p8 }
  0x7f   : > { %3297 = shalt.err (!%p3294_p13)
}
  0x80   : > { %s3298_s6 = scalar_lea.vmem %s299_s23, 128  ;;  %s3397_s25 = smov [#allocation6]  }
  0x81   : > { %p3299_p0 = scmp.ne.s32.totalorder %s299_s23, %s3298_s6  ;;  %s3302_s8 = sshll.u32 %s3397_s25, 4  ;;  %s3303_s8 = int_to_ptr.vmem [resolvable:$false] %s3302_s8 }
  0x82   : > { %s3304_s12 = scalar_lea.vmem %s3303_s8, 256  ;;  %p3305_p5 = scmp.lt.s32.totalorder %s299_s23, %s3303_s8 }
  0x83   : > { %p3300_p4 = pnand %p3299_p0, %p4032_p12  ;;  %p3306_p3 = scmp.lt.s32.totalorder %s3304_s12, %s3298_s6 }
  0x85   : > { %p3301_p10 = pneg %p3300_p4  ;;  %p3307_p7 = por %p3306_p3, %p3305_p5 }
  0x87   : > { %p3308_p1 = pnand %p3307_p7, %p3301_p10 }
  0x89   : > { %3311 = shalt.err (!%p3308_p1)
}
  0x8a   : > { %2787 = dma.hbm_to_vmem [thread:$0]  (%p4032_p12), %s3644_s17, 128, %s299_s23, %s285_s22  }
  0x8b   : > { %s305_s7 = sand.u32 1, %s3390_s30   ;;  %s2451_s9 = sshll.u32 %s3637_s24, 10 }
  0x8c   : > { %s2778_s20 = sshll.u32 %s3497_s11, 13  ;;  %s309_s18 = scalar_lea.vmem [#allocation8], %s2451_s9 }
  0x8d   : > { %s318_s10 = scalar_lea.hbm %s3994_s1, %s2778_s20  ;;  %s331_s2 = sshll.u32 %s309_s18, 4  ;;  %s332_s2 = int_to_ptr.vmem [resolvable:$true] %s331_s2 }
  0x8e   : > { %s2788_s17 = scalar_select %p4032_p12, [#allocation0], [#allocation20] }
  0x8f   : > { %s3398_s22 = smov 32768   ;;  %s3399_s6 = smov 8192  }
  0x90   : > { %s323_s23 = sld [smem:[%s2788_s17]]   ;;  %s3400_s24 = smov 32  }
  0x91   : > { %2789 = sst [smem:[#allocation17]] (%p4032_p12), %s3398_s22  ;;  %s3401_s11 = smov 256  }
  0x92   : > { %2790 = sst [smem:[#allocation17 + $0x1]] (%p4032_p12), %s3399_s6  ;;  %s3402_s25 = smov 16  }
  0x93   : > { %2791 = sst [smem:[#allocation17 + $0x2]] (%p4032_p12), %s3400_s24  ;;  %s306_s9 = scalar_lea.sflag [#allocation9], %s305_s7 }
  0x94   : > { %2792 = sst [smem:[#allocation17 + $0x3]] (%p4032_p12), %s3401_s11  ;;  %s3403_s20 = smov [#allocation16]  }
  0x95   : > { %2793 = sst [smem:[#allocation17 + $0x4]] (%p4032_p12), %s3401_s11 }
  0x96   : > { %2794 = sst [smem:[#allocation17 + $0x5]] (%p4032_p12), %s3402_s25  ;;  %s2455_s8 = sshll.u32 %s323_s23, 26 }
  0x97   : > { %s2456_s12 = sadd.s32 134217728, %s2455_s8 }
  0x98   : > { %2795 = dma.general (%p4032_p12), %s318_s10, 16384, %s332_s2, %s306_s9, %s3403_s20, [#allocation17], %s2456_s12, 0  }
  0x99   : > { %s356_s13 = sand.u32 1, %s3374_s26   ;;  %s2780_s18 = sshll.u32 %s4064_s16, 12 }
  0x9a   : > { %s2457_s19 = sshll.u32 %s356_s13, 9  ;;  %p4033_p8 = scmp.ne.s32.totalorder %s4024_s21, 0 }
  0x9b   : > { %s368_s6 = scalar_lea.hbm %s3996_s3, %s2780_s18  ;;  %s358_s10 = scalar_lea.vmem [#allocation11], %s2457_s19 }
  0x9c   : > { %s2796_s17 = scalar_select %p4033_p8, [#allocation0], [#allocation21] }
  0x9d   : > { %s381_s2 = sshll.u32 %s358_s10, 4  ;;  %s3404_s24 = smov 16384   ;;  %s382_s2 = int_to_ptr.vmem [resolvable:$true] %s381_s2 }
  0x9e   : > { %s373_s14 = sld [smem:[%s2796_s17]]   ;;  %s3405_s11 = smov 4096  }
  0x9f   : > { %2797 = sst [smem:[#allocation19]] (%p4033_p8), %s3404_s24  ;;  %s3406_s25 = smov 16  }
  0xa0   : > { %2798 = sst [smem:[#allocation19 + $0x1]] (%p4033_p8), %s3405_s11  ;;  %s3407_s16 = smov 256  }
  0xa1   : > { %2799 = sst [smem:[#allocation19 + $0x2]] (%p4033_p8), %s3406_s25  ;;  %s355_s9 = scalar_lea.sflag [#allocation12], %s305_s7 }
  0xa2   : > { %2800 = sst [smem:[#allocation19 + $0x3]] (%p4033_p8), %s3407_s16  ;;  %s3408_s20 = smov [#allocation18]  }
  0xa3   : > { %2801 = sst [smem:[#allocation19 + $0x4]] (%p4033_p8), %s3407_s16 }
  0xa4   : > { %s2462_s8 = sshll.u32 %s373_s14, 26  ;;  %2802 = sst [smem:[#allocation19 + $0x5]] (%p4033_p8), %s3406_s25 }
  0xa5   : > { %s2463_s12 = sadd.s32 134217728, %s2462_s8 }
  0xa6   : > { %2803 = dma.general (%p4033_p8), %s368_s6, 8192, %s382_s2, %s355_s9, %s3408_s20, [#allocation19], %s2463_s12, 0  }
  0xa7 PF: > { %p4034_p12 = scmp.ne.s32.totalorder %s4028_s27, 0 }
  0xa8   : > { %s408_s13 = sand.u32 (!%p4034_p12), 1, %s3382_s28   ;;  %p4035_p2 = scmp.ne.s32.totalorder (!%p4034_p12), %s4022_s15, 0 }
  0xa9   : > { %406 = sbr.rel (%p4034_p12) target bundleno = 1210 (0x4ba), region = 48  ;;  %s2465_s19 = sshll.u32 (!%p4034_p12), %s408_s13, 3 }
  0xaa   : > { %s409_s18 = scalar_lea.sflag (!%p4034_p12), [#allocation7], %s408_s13  ;;  %s3714_s17 = scalar_lea.vmem (!%p4034_p12), [#allocation6], %s2465_s19 }
  0xb0   : > { %3341 = dma.done.wait (%p4035_p2), %s409_s18, 128  }
  0xb1   : > { %3343 = vsyncadd (%p4035_p2), %s409_s18, 4294967168  ;;  %s4036_s30 = sld [smem:[#allocation29_spill]]  ;;  %s2466_s7 = sshll.u32 %s408_s13, 10 }
  0xb2   : > { %s3721_s22 = scalar_lea.vmem [#allocation8], %s2466_s7 }
  0xb7   : > { %s417_s21 = sand.u32 1, %s4036_s30  }
  0xb8   : > { %s418_s23 = scalar_lea.sflag [#allocation9], %s417_s21 }
  0xb9   : > { %3345 = dma.done.wait (%p4035_p2), %s418_s23, 16384  }
  0xba   : > { %3347 = vsyncadd (%p4035_p2), %s418_s23, 4294950912  ;;  %p4037_p6 = scmp.eq.s32.totalorder %s4036_s30, 0 }
  0xbc   : > { %3349 = dma.done.wait (%p4037_p6), [#allocation9], 128   ;;  %p4038_p9 = pmov %p4037_p6 }
  0xbd   : > { %s4039_s27 = sld [smem:[#allocation28_spill]]  ;;  %s4040_s6 = sld [smem:[#allocation32_spill]] }
  0xbe   : > { %3351 = vsyncadd (%p4038_p9), [#allocation9], 4294967168  ;;  %s431_s2 = scalar_lea.sflag [#allocation12], %s417_s21 }
  0xc3   : > { %s432_s14 = sand.u32 1, %s4039_s27   ;;  %p4041_p11 = scmp.ne.s32.totalorder %s4040_s6, 0 }
  0xc4   : > { %s2468_s10 = sshll.u32 %s432_s14, 9 }
  0xc5   : > { %s3732_s24 = scalar_lea.vmem [#allocation11], %s2468_s10 }
  0xc6   : > { %3353 = dma.done.wait (%p4041_p11), %s431_s2, 8192  }
  0xc7   : > { %3355 = vsyncadd (%p4041_p11), %s431_s2, 4294959104  ;;  %p4042_p13 = pmov %p4037_p6 }
  0xc8   : > { %p4043_p0 = pmov %p4037_p6 }
  0xc9   : > { %3357 = dma.done.wait (%p4042_p13), [#allocation12], 128  }
  0xca   : > { %3359 = vsyncadd (%p4043_p0), [#allocation12], 4294967168  ;;  %p4044_p4 = pmov %p4043_p0 }
  0xcb   : > { %p4045_p10 = pmov %p4043_p0 }
  0xcc   : > { %3361 = dma.done.wait (%p4044_p4), [#allocation15], 128  }
  0xcd   : > { %3363 = vsyncadd (%p4045_p10), [#allocation15], 4294967168  ;;  %p4046_p5 = scmp.ne.s32.totalorder %s4036_s30, 0 }
  0xce   : > { %v3409_v0 = vmov (!%p4046_p5), 0.0  }
  0xcf   : > { %492 = sbr.rel (%p4046_p5) target bundleno = 215 (0xd7), region = 76  ;;  %493 = vst [vmem:[#allocation2] sm:$0xff] (!%p4046_p5), %v3409_v0  ;;  %494 = vst [vmem:[#allocation2 + $0x8] sm:$0xff] (!%p4046_p5), %v3409_v0 }
  0xd0   : > { %495 = vst [vmem:[#allocation2 + $0x10] sm:$0xff] (!%p4046_p5), %v3409_v0  ;;  %496 = vst [vmem:[#allocation2 + $0x18] sm:$0xff] (!%p4046_p5), %v3409_v0 }
  0xd1   : > { %497 = vst [vmem:[#allocation3] sm:$0xff] (!%p4046_p5), %v3409_v0  ;;  %498 = vst [vmem:[#allocation3 + $0x8] sm:$0xff] (!%p4046_p5), %v3409_v0 }
  0xd2   : > { %499 = vst [vmem:[#allocation3 + $0x10] sm:$0xff] (!%p4046_p5), %v3409_v0  ;;  %500 = vst [vmem:[#allocation3 + $0x18] sm:$0xff] (!%p4046_p5), %v3409_v0 }
  0xd3   : > { %501 = vst [vmem:[#allocation4] sm:$0xff] (!%p4046_p5), %v3409_v0  ;;  %502 = vst [vmem:[#allocation4 + $0x8] sm:$0xff] (!%p4046_p5), %v3409_v0 }
  0xd4   : > { %503 = vst [vmem:[#allocation4 + $0x10] sm:$0xff] (!%p4046_p5), %v3409_v0  ;;  %504 = vst [vmem:[#allocation4 + $0x18] sm:$0xff] (!%p4046_p5), %v3409_v0 }
  0xd5   : > { %505 = vst [vmem:[#allocation5] sm:$0xff] (!%p4046_p5), %v3409_v0  ;;  %506 = vst [vmem:[#allocation5 + $0x8] sm:$0xff] (!%p4046_p5), %v3409_v0 }
  0xd6   : > { %507 = vst [vmem:[#allocation5 + $0x10] sm:$0xff] %v3409_v0  ;;  %508 = vst [vmem:[#allocation5 + $0x18] sm:$0xff] %v3409_v0 }
  0xd7 PF: > { %s4047_s15 = sld [smem:[#allocation29_spill]] }
  0xdd   : > { %p2472_p3 = scmp.ge.s32.totalorder %s4047_s15, 4 }
  0xde   : > { %v2904_v1 = vld [vmem:[%s3721_s22 + $0x4] ss:$16 sps:$4 sm:$0xff] (!%p2472_p3)   ;;  %v2906_v2 = vld [vmem:[%s3721_s22 + $0xc] ss:$16 sps:$4 sm:$0xff] (!%p2472_p3)   ;;  %v2908_v3 = vld [vmem:[%s3721_s22] ss:$16 sps:$4 sm:$0xff] (!%p2472_p3)  }
  0xdf   : > { %512 = sbr.rel (%p2472_p3) target bundleno = 567 (0x237), region = 80  ;;  %909 = vmatprep.subr.bf16.mxu0 (!%p2472_p3), %v2904_v1  ;;  %v2909_v4 = vld [vmem:[%s3721_s22 + $0x8] ss:$16 sps:$4 sm:$0xff] (!%p2472_p3)   ;;  %950 = vmatprep.subr.bf16.mxu1 (!%p2472_p3), %v2906_v2  ;;  %v2910_v5 = vld [vmem:[%s3721_s22 + $0x24] ss:$16 sps:$4 sm:$0xff] (!%p2472_p3)  }
  0xe0   : > { %910 = vmatpush1.bf16.msra.mxu0 (!%p2472_p3), %v2908_v3  ;;  %951 = vmatpush1.bf16.msra.mxu1 (!%p2472_p3), %v2909_v4  ;;  %v2912_v6 = vld [vmem:[%s3721_s22 + $0x2c] ss:$16 sps:$4 sm:$0xff] (!%p2472_p3)   ;;  %v2914_v7 = vld [vmem:[%s3721_s22 + $0x20] ss:$16 sps:$4 sm:$0xff] (!%p2472_p3)   ;;  %v2915_v8 = vld [vmem:[%s3721_s22 + $0x28] ss:$16 sps:$4 sm:$0xff] (!%p2472_p3)  }
  0xe1   : > { %911 = vmatprep.subr.bf16.mxu0 (!%p2472_p3), %v2910_v5  ;;  %952 = vmatprep.subr.bf16.mxu1 (!%p2472_p3), %v2912_v6  ;;  %v2916_v9 = vld [vmem:[%s3721_s22 + $0x44] ss:$16 sps:$4 sm:$0xff] (!%p2472_p3)   ;;  %v2918_v10 = vld [vmem:[%s3721_s22 + $0x4c] ss:$16 sps:$4 sm:$0xff] (!%p2472_p3)   ;;  %v2920_v11 = vld [vmem:[%s3721_s22 + $0x40] ss:$16 sps:$4 sm:$0xff] (!%p2472_p3)  }
  0xe2   : > { %v2921_v12 = vld [vmem:[%s3721_s22 + $0x48] ss:$16 sps:$4 sm:$0xff] (!%p2472_p3)   ;;  %v2922_v13 = vld [vmem:[%s3721_s22 + $0x64] ss:$16 sps:$4 sm:$0xff] (!%p2472_p3)   ;;  %v2924_v14 = vld [vmem:[%s3721_s22 + $0x6c] ss:$16 sps:$4 sm:$0xff] (!%p2472_p3)  }
  0xe3   : > { %v2926_v15 = vld [vmem:[%s3721_s22 + $0x60] ss:$16 sps:$4 sm:$0xff] (!%p2472_p3)   ;;  %v2927_v16 = vld [vmem:[%s3721_s22 + $0x68] ss:$16 sps:$4 sm:$0xff] (!%p2472_p3)   ;;  %v2928_v17 = vld [vmem:[%s3721_s22 + $0x84] ss:$16 sps:$4 sm:$0xff] (!%p2472_p3)  }
  0xe4   : > { %912 = vmatpush1.bf16.msra.mxu0 (!%p2472_p3), %v2914_v7  ;;  %953 = vmatpush1.bf16.msra.mxu1 (!%p2472_p3), %v2915_v8  ;;  %v2930_v18 = vld [vmem:[%s3721_s22 + $0x8c] ss:$16 sps:$4 sm:$0xff] (!%p2472_p3)   ;;  %v2932_v19 = vld [vmem:[%s3721_s22 + $0x80] ss:$16 sps:$4 sm:$0xff] (!%p2472_p3)   ;;  %v2933_v20 = vld [vmem:[%s3721_s22 + $0x88] ss:$16 sps:$4 sm:$0xff] (!%p2472_p3)  }
  0xe5   : > { %913 = vmatprep.subr.bf16.mxu0 (!%p2472_p3), %v2916_v9  ;;  %954 = vmatprep.subr.bf16.mxu1 (!%p2472_p3), %v2918_v10  ;;  %v2934_v21 = vld [vmem:[%s3721_s22 + $0xa4] ss:$16 sps:$4 sm:$0xff] (!%p2472_p3)   ;;  %v2936_v22 = vld [vmem:[%s3721_s22 + $0xac] ss:$16 sps:$4 sm:$0xff] (!%p2472_p3)   ;;  %v2938_v23 = vld [vmem:[%s3721_s22 + $0xa0] ss:$16 sps:$4 sm:$0xff] (!%p2472_p3)  }
  0xe6   : > { %v2939_v24 = vld [vmem:[%s3721_s22 + $0xa8] ss:$16 sps:$4 sm:$0xff]   ;;  %v2940_v25 = vld [vmem:[%s3721_s22 + $0xc4] ss:$16 sps:$4 sm:$0xff]   ;;  %v2942_v26 = vld [vmem:[%s3721_s22 + $0xcc] ss:$16 sps:$4 sm:$0xff]  }
  0xe7   : > { %v2944_v27 = vld [vmem:[%s3721_s22 + $0xc0] ss:$16 sps:$4 sm:$0xff]   ;;  %v2945_v28 = vld [vmem:[%s3721_s22 + $0xc8] ss:$16 sps:$4 sm:$0xff]   ;;  %v2946_v29 = vld [vmem:[%s3721_s22 + $0xe4] ss:$16 sps:$4 sm:$0xff]  }
  0xe8   : > { %914 = vmatpush1.bf16.msra.mxu0 %v2920_v11  ;;  %955 = vmatpush1.bf16.msra.mxu1 %v2921_v12  ;;  %v2948_v30 = vld [vmem:[%s3721_s22 + $0xec] ss:$16 sps:$4 sm:$0xff]   ;;  %v2950_v31 = vld [vmem:[%s3721_s22 + $0xe0] ss:$16 sps:$4 sm:$0xff]   ;;  %v2951_v32 = vld [vmem:[%s3721_s22 + $0xe8] ss:$16 sps:$4 sm:$0xff]  }
  0xe9   : > { %915 = vmatprep.subr.bf16.mxu0 %v2922_v13  ;;  %956 = vmatprep.subr.bf16.mxu1 %v2924_v14  ;;  %v2952_v33 = vld [vmem:[%s3721_s22 + $0x104] ss:$16 sps:$4 sm:$0xff]   ;;  %v2954_v34 = vld [vmem:[%s3721_s22 + $0x10c] ss:$16 sps:$4 sm:$0xff]   ;;  %v2956_v35 = vld [vmem:[%s3721_s22 + $0x100] ss:$16 sps:$4 sm:$0xff]  }
  0xea   : > { %v2957_v36 = vld [vmem:[%s3721_s22 + $0x108] ss:$16 sps:$4 sm:$0xff]   ;;  %v2958_v37 = vld [vmem:[%s3721_s22 + $0x124] ss:$16 sps:$4 sm:$0xff]   ;;  %v2960_v38 = vld [vmem:[%s3721_s22 + $0x12c] ss:$16 sps:$4 sm:$0xff]  }
  0xeb   : > { %v2962_v39 = vld [vmem:[%s3721_s22 + $0x120] ss:$16 sps:$4 sm:$0xff]   ;;  %v2963_v40 = vld [vmem:[%s3721_s22 + $0x128] ss:$16 sps:$4 sm:$0xff]   ;;  %v2964_v41 = vld [vmem:[%s3721_s22 + $0x144] ss:$16 sps:$4 sm:$0xff]  }
  0xec   : > { %916 = vmatpush1.bf16.msra.mxu0 %v2926_v15  ;;  %957 = vmatpush1.bf16.msra.mxu1 %v2927_v16  ;;  %v2966_v42 = vld [vmem:[%s3721_s22 + $0x14c] ss:$16 sps:$4 sm:$0xff]   ;;  %v2968_v43 = vld [vmem:[%s3721_s22 + $0x140] ss:$16 sps:$4 sm:$0xff]   ;;  %v2969_v44 = vld [vmem:[%s3721_s22 + $0x148] ss:$16 sps:$4 sm:$0xff]  }
  0xed   : > { %917 = vmatprep.subr.bf16.mxu0 %v2928_v17  ;;  %958 = vmatprep.subr.bf16.mxu1 %v2930_v18  ;;  %v2970_v45 = vld [vmem:[%s3721_s22 + $0x164] ss:$16 sps:$4 sm:$0xff]   ;;  %v2972_v46 = vld [vmem:[%s3721_s22 + $0x16c] ss:$16 sps:$4 sm:$0xff]   ;;  %v2974_v48 = vld [vmem:[%s3721_s22 + $0x160] ss:$16 sps:$4 sm:$0xff]  }
  0xee   : > { %v513_v47 = vld [vmem:[%s3714_s17] sm:$0xff] }
  0xef   : > { %v2474_v49 = vcombine.high %v513_v47, %v513_v47  ;;  %v2975_v50 = vld [vmem:[%s3721_s22 + $0x168] ss:$16 sps:$4 sm:$0xff]   ;;  %v2976_v51 = vld [vmem:[%s3721_s22 + $0x184] ss:$16 sps:$4 sm:$0xff]   ;;  %v2978_v52 = vld [vmem:[%s3721_s22 + $0x18c] ss:$16 sps:$4 sm:$0xff]   ;;  %v3816_v5 = vcombine.low %v513_v47, %v513_v47 }
  0xf0   : > { %918 = vmatpush1.bf16.msra.mxu0 %v2932_v19  ;;  %959 = vmatpush1.bf16.msra.mxu1 %v2933_v20  ;;  %v2980_v53 = vld [vmem:[%s3721_s22 + $0x180] ss:$16 sps:$4 sm:$0xff]   ;;  %v2981_v54 = vld [vmem:[%s3721_s22 + $0x188] ss:$16 sps:$4 sm:$0xff]   ;;  %v2982_v55 = vld [vmem:[%s3721_s22 + $0x1a4] ss:$16 sps:$4 sm:$0xff]  }
  0xf1   : > { %919 = vmatprep.subr.bf16.mxu0 %v2934_v21  ;;  %960 = vmatprep.subr.bf16.mxu1 %v2936_v22  ;;  %v2984_v56 = vld [vmem:[%s3721_s22 + $0x1ac] ss:$16 sps:$4 sm:$0xff]   ;;  %v2986_v57 = vld [vmem:[%s3721_s22 + $0x1a0] ss:$16 sps:$4 sm:$0xff]   ;;  %v2987_v58 = vld [vmem:[%s3721_s22 + $0x1a8] ss:$16 sps:$4 sm:$0xff]  }
  0xf2   : > { %941 = vmatprep.mubr.bf16.mxu0 %v2474_v49  ;;  %982 = vmatprep.mubr.bf16.mxu1 %v2474_v49  ;;  %v2988_v59 = vld [vmem:[%s3721_s22 + $0x1c4] ss:$16 sps:$4 sm:$0xff]   ;;  %v2990_v60 = vld [vmem:[%s3721_s22 + $0x1cc] ss:$16 sps:$4 sm:$0xff]   ;;  %v2992_v61 = vld [vmem:[%s3721_s22 + $0x1c0] ss:$16 sps:$4 sm:$0xff]  }
  0xf3   : > { %v2993_v62 = vld [vmem:[%s3721_s22 + $0x1c8] ss:$16 sps:$4 sm:$0xff]   ;;  %v2994_v63 = vld [vmem:[%s3721_s22 + $0x1e4] ss:$16 sps:$4 sm:$0xff]   ;;  %v2996_v0 = vld [vmem:[%s3721_s22 + $0x1ec] ss:$16 sps:$4 sm:$0xff]  }
  0xf4   : > { %920 = vmatpush1.bf16.msra.mxu0 %v2938_v23  ;;  %961 = vmatpush1.bf16.msra.mxu1 %v2939_v24  ;;  %v2998_v1 = vld [vmem:[%s3721_s22 + $0x1e0] ss:$16 sps:$4 sm:$0xff]   ;;  %v2999_v2 = vld [vmem:[%s3721_s22 + $0x1e8] ss:$16 sps:$4 sm:$0xff]   ;;  %v3004_v3 = vld [vmem:[%s3721_s22 + $0x204] ss:$16 sps:$4 sm:$0xff]  }
  0xf5   : > { %921 = vmatprep.subr.bf16.mxu0 %v2940_v25  ;;  %962 = vmatprep.subr.bf16.mxu1 %v2942_v26  ;;  %v3007_v4 = vld [vmem:[%s3721_s22 + $0x20c] ss:$16 sps:$4 sm:$0xff]   ;;  %v3002_v6 = vld [vmem:[%s3721_s22 + $0x200] ss:$16 sps:$4 sm:$0xff]   ;;  %v3005_v7 = vld [vmem:[%s3721_s22 + $0x208] ss:$16 sps:$4 sm:$0xff]  }
  0xf6   : > { %v3010_v8 = vld [vmem:[%s3721_s22 + $0x224] ss:$16 sps:$4 sm:$0xff]   ;;  %v3013_v9 = vld [vmem:[%s3721_s22 + $0x22c] ss:$16 sps:$4 sm:$0xff]   ;;  %v3008_v10 = vld [vmem:[%s3721_s22 + $0x220] ss:$16 sps:$4 sm:$0xff]  }
  0xf7   : > { %v3011_v11 = vld [vmem:[%s3721_s22 + $0x228] ss:$16 sps:$4 sm:$0xff]   ;;  %v3016_v12 = vld [vmem:[%s3721_s22 + $0x244] ss:$16 sps:$4 sm:$0xff]   ;;  %v3019_v13 = vld [vmem:[%s3721_s22 + $0x24c] ss:$16 sps:$4 sm:$0xff]  }
  0xf8   : > { %922 = vmatpush1.bf16.msra.mxu0 %v2944_v27  ;;  %963 = vmatpush1.bf16.msra.mxu1 %v2945_v28  ;;  %v3014_v14 = vld [vmem:[%s3721_s22 + $0x240] ss:$16 sps:$4 sm:$0xff]   ;;  %v3017_v15 = vld [vmem:[%s3721_s22 + $0x248] ss:$16 sps:$4 sm:$0xff]   ;;  %v3022_v16 = vld [vmem:[%s3721_s22 + $0x264] ss:$16 sps:$4 sm:$0xff]  }
  0xf9   : > { %923 = vmatprep.subr.bf16.mxu0 %v2946_v29  ;;  %964 = vmatprep.subr.bf16.mxu1 %v2948_v30  ;;  %v3025_v17 = vld [vmem:[%s3721_s22 + $0x26c] ss:$16 sps:$4 sm:$0xff]   ;;  %v3020_v18 = vld [vmem:[%s3721_s22 + $0x260] ss:$16 sps:$4 sm:$0xff]   ;;  %v3023_v19 = vld [vmem:[%s3721_s22 + $0x268] ss:$16 sps:$4 sm:$0xff]  }
  0xfa   : > { %v3028_v20 = vld [vmem:[%s3721_s22 + $0x284] ss:$16 sps:$4 sm:$0xff]   ;;  %v3031_v21 = vld [vmem:[%s3721_s22 + $0x28c] ss:$16 sps:$4 sm:$0xff]   ;;  %v3026_v22 = vld [vmem:[%s3721_s22 + $0x280] ss:$16 sps:$4 sm:$0xff]  }
  0xfb   : > { %v3029_v23 = vld [vmem:[%s3721_s22 + $0x288] ss:$16 sps:$4 sm:$0xff]   ;;  %v3034_v24 = vld [vmem:[%s3721_s22 + $0x2a4] ss:$16 sps:$4 sm:$0xff]   ;;  %v3037_v25 = vld [vmem:[%s3721_s22 + $0x2ac] ss:$16 sps:$4 sm:$0xff]  }
  0xfc   : > { %924 = vmatpush1.bf16.msra.mxu0 %v2950_v31  ;;  %965 = vmatpush1.bf16.msra.mxu1 %v2951_v32  ;;  %v3032_v26 = vld [vmem:[%s3721_s22 + $0x2a0] ss:$16 sps:$4 sm:$0xff]   ;;  %v3035_v27 = vld [vmem:[%s3721_s22 + $0x2a8] ss:$16 sps:$4 sm:$0xff]   ;;  %v3040_v28 = vld [vmem:[%s3721_s22 + $0x2c4] ss:$16 sps:$4 sm:$0xff]  }
  0xfd   : > { %925 = vmatprep.subr.bf16.mxu0 %v2952_v33  ;;  %966 = vmatprep.subr.bf16.mxu1 %v2954_v34  ;;  %v3043_v29 = vld [vmem:[%s3721_s22 + $0x2cc] ss:$16 sps:$4 sm:$0xff]   ;;  %v3038_v30 = vld [vmem:[%s3721_s22 + $0x2c0] ss:$16 sps:$4 sm:$0xff]   ;;  %v3041_v31 = vld [vmem:[%s3721_s22 + $0x2c8] ss:$16 sps:$4 sm:$0xff]  }
  0xfe   : > { %v3046_v32 = vld [vmem:[%s3721_s22 + $0x2e4] ss:$16 sps:$4 sm:$0xff]   ;;  %v3049_v33 = vld [vmem:[%s3721_s22 + $0x2ec] ss:$16 sps:$4 sm:$0xff]   ;;  %v3044_v34 = vld [vmem:[%s3721_s22 + $0x2e0] ss:$16 sps:$4 sm:$0xff]  }
  0xff   : > { %v3065_v47 = vld [vmem:[%s3721_s22 + $0x348] ss:$16 sps:$4 sm:$0xff]  }
 0x100   : > { %926 = vmatpush1.bf16.msra.mxu0 %v2956_v35  ;;  %967 = vmatpush1.bf16.msra.mxu1 %v2957_v36  ;;  %v3047_v35 = vld [vmem:[%s3721_s22 + $0x2e8] ss:$16 sps:$4 sm:$0xff]   ;;  %v3052_v36 = vld [vmem:[%s3721_s22 + $0x304] ss:$16 sps:$4 sm:$0xff]  }
 0x101   : > { %927 = vmatprep.subr.bf16.mxu0 %v2958_v37  ;;  %968 = vmatprep.subr.bf16.mxu1 %v2960_v38  ;;  %v3055_v37 = vld [vmem:[%s3721_s22 + $0x30c] ss:$16 sps:$4 sm:$0xff]   ;;  %v3050_v38 = vld [vmem:[%s3721_s22 + $0x300] ss:$16 sps:$4 sm:$0xff]  }
 0x104   : > { %928 = vmatpush1.bf16.msra.mxu0 %v2962_v39  ;;  %969 = vmatpush1.bf16.msra.mxu1 %v2963_v40  ;;  %v3053_v39 = vld [vmem:[%s3721_s22 + $0x308] ss:$16 sps:$4 sm:$0xff]   ;;  %v3058_v40 = vld [vmem:[%s3721_s22 + $0x324] ss:$16 sps:$4 sm:$0xff]  }
 0x105   : > { %929 = vmatprep.subr.bf16.mxu0 %v2964_v41  ;;  %970 = vmatprep.subr.bf16.mxu1 %v2966_v42  ;;  %v3061_v41 = vld [vmem:[%s3721_s22 + $0x32c] ss:$16 sps:$4 sm:$0xff]   ;;  %v3056_v42 = vld [vmem:[%s3721_s22 + $0x320] ss:$16 sps:$4 sm:$0xff]  }
 0x108   : > { %930 = vmatpush1.bf16.msra.mxu0 %v2968_v43  ;;  %971 = vmatpush1.bf16.msra.mxu1 %v2969_v44  ;;  %v3059_v43 = vld [vmem:[%s3721_s22 + $0x328] ss:$16 sps:$4 sm:$0xff]   ;;  %v3064_v44 = vld [vmem:[%s3721_s22 + $0x344] ss:$16 sps:$4 sm:$0xff]  }
 0x109   : > { %931 = vmatprep.subr.bf16.mxu0 %v2970_v45  ;;  %972 = vmatprep.subr.bf16.mxu1 %v2972_v46  ;;  %v3067_v45 = vld [vmem:[%s3721_s22 + $0x34c] ss:$16 sps:$4 sm:$0xff]   ;;  %v3062_v46 = vld [vmem:[%s3721_s22 + $0x340] ss:$16 sps:$4 sm:$0xff]  }
 0x10c   : > { %932 = vmatpush1.bf16.msra.mxu0 %v2974_v48  ;;  %973 = vmatpush1.bf16.msra.mxu1 %v2975_v50  ;;  %v3070_v48 = vld [vmem:[%s3721_s22 + $0x364] ss:$16 sps:$4 sm:$0xff]   ;;  %v3068_v50 = vld [vmem:[%s3721_s22 + $0x360] ss:$16 sps:$4 sm:$0xff]  }
 0x10d   : > { %933 = vmatprep.subr.bf16.mxu0 %v2976_v51  ;;  %974 = vmatprep.subr.bf16.mxu1 %v2978_v52  ;;  %v3071_v51 = vld [vmem:[%s3721_s22 + $0x368] ss:$16 sps:$4 sm:$0xff]   ;;  %v3076_v52 = vld [vmem:[%s3721_s22 + $0x384] ss:$16 sps:$4 sm:$0xff]  }
 0x110   : > { %934 = vmatpush1.bf16.msra.mxu0 %v2980_v53  ;;  %975 = vmatpush1.bf16.msra.mxu1 %v2981_v54  ;;  %v3079_v53 = vld [vmem:[%s3721_s22 + $0x38c] ss:$16 sps:$4 sm:$0xff]   ;;  %v3074_v54 = vld [vmem:[%s3721_s22 + $0x380] ss:$16 sps:$4 sm:$0xff]  }
 0x111   : > { %935 = vmatprep.subr.bf16.mxu0 %v2982_v55  ;;  %976 = vmatprep.subr.bf16.mxu1 %v2984_v56  ;;  %v3077_v55 = vld [vmem:[%s3721_s22 + $0x388] ss:$16 sps:$4 sm:$0xff]   ;;  %v3082_v56 = vld [vmem:[%s3721_s22 + $0x3a4] ss:$16 sps:$4 sm:$0xff]  }
 0x114   : > { %936 = vmatpush1.bf16.msra.mxu0 %v2986_v57  ;;  %977 = vmatpush1.bf16.msra.mxu1 %v2987_v58  ;;  %v3085_v57 = vld [vmem:[%s3721_s22 + $0x3ac] ss:$16 sps:$4 sm:$0xff]   ;;  %v3080_v58 = vld [vmem:[%s3721_s22 + $0x3a0] ss:$16 sps:$4 sm:$0xff]  }
 0x115   : > { %937 = vmatprep.subr.bf16.mxu0 %v2988_v59  ;;  %978 = vmatprep.subr.bf16.mxu1 %v2990_v60  ;;  %v3083_v59 = vld [vmem:[%s3721_s22 + $0x3a8] ss:$16 sps:$4 sm:$0xff]   ;;  %v3088_v60 = vld [vmem:[%s3721_s22 + $0x3c4] ss:$16 sps:$4 sm:$0xff]  }
 0x118   : > { %938 = vmatpush1.bf16.msra.mxu0 %v2992_v61  ;;  %979 = vmatpush1.bf16.msra.mxu1 %v2993_v62  ;;  %v3091_v61 = vld [vmem:[%s3721_s22 + $0x3cc] ss:$16 sps:$4 sm:$0xff]   ;;  %v3086_v62 = vld [vmem:[%s3721_s22 + $0x3c0] ss:$16 sps:$4 sm:$0xff]  }
 0x119   : > { %939 = vmatprep.subr.bf16.mxu0 %v2994_v63  ;;  %980 = vmatprep.subr.bf16.mxu1 %v2996_v0  ;;  %v3089_v63 = vld [vmem:[%s3721_s22 + $0x3c8] ss:$16 sps:$4 sm:$0xff]   ;;  %v3094_v0 = vld [vmem:[%s3721_s22 + $0x3e4] ss:$16 sps:$4 sm:$0xff]  }
 0x11c   : > { %940 = vmatpush1.bf16.msra.mxu0 %v2998_v1  ;;  %981 = vmatpush1.bf16.msra.mxu1 %v2999_v2  ;;  %v3097_v1 = vld [vmem:[%s3721_s22 + $0x3ec] ss:$16 sps:$4 sm:$0xff]   ;;  %v3092_v2 = vld [vmem:[%s3721_s22 + $0x3e0] ss:$16 sps:$4 sm:$0xff]  }
 0x11d   : > { %1388 = vmatprep.subr.bf16.mxu0 %v3004_v3  ;;  %1429 = vmatprep.subr.bf16.mxu1 %v3007_v4  ;;  %v3095_v3 = vld [vmem:[%s3721_s22 + $0x3e8] ss:$16 sps:$4 sm:$0xff]   ;;  %v514_v4 = vld [vmem:[#allocation2] sm:$0xff] }
 0x11f   : > { %942 = vmatmul.mubr.bf16.vlgmr.msra.gmra.mrb[0].mxu0 %v3816_v5  ;;  %983 = vmatmul.mubr.bf16.vlgmr.msra.gmra.mrb[0].mxu1 %v3816_v5 }
 0x120   : > { %1389 = vmatpush1.bf16.msra.mxu0 %v3002_v6  ;;  %1430 = vmatpush1.bf16.msra.mxu1 %v3005_v7  ;;  %v516_v6 = vld [vmem:[#allocation2 + $0x10] sm:$0xff]  ;;  %v515_v7 = vld [vmem:[#allocation2 + $0x8] sm:$0xff] }
 0x121   : > { %1390 = vmatprep.subr.bf16.mxu0 %v3010_v8  ;;  %1431 = vmatprep.subr.bf16.mxu1 %v3013_v9  ;;  %v517_v8 = vld [vmem:[#allocation2 + $0x18] sm:$0xff] }
 0x122   : > { %1420 = vmatprep.mubr.bf16.mxu0 %v2474_v49  ;;  %1461 = vmatprep.mubr.bf16.mxu1 %v2474_v49  ;;  %v3073_v49 = vld [vmem:[%s3721_s22 + $0x36c] ss:$16 sps:$4 sm:$0xff]  }
 0x124   : > { %1391 = vmatpush1.bf16.msra.mxu0 %v3008_v10  ;;  %1432 = vmatpush1.bf16.msra.mxu1 %v3011_v11 }
 0x125   : > { %1392 = vmatprep.subr.bf16.mxu0 %v3016_v12  ;;  %1433 = vmatprep.subr.bf16.mxu1 %v3019_v13 }
 0x128   : > { %1393 = vmatpush1.bf16.msra.mxu0 %v3014_v14  ;;  %1434 = vmatpush1.bf16.msra.mxu1 %v3017_v15 }
 0x129   : > { %1394 = vmatprep.subr.bf16.mxu0 %v3022_v16  ;;  %1435 = vmatprep.subr.bf16.mxu1 %v3025_v17 }
 0x12c   : > { %1395 = vmatpush1.bf16.msra.mxu0 %v3020_v18  ;;  %1436 = vmatpush1.bf16.msra.mxu1 %v3023_v19 }
 0x12d   : > { %1396 = vmatprep.subr.bf16.mxu0 %v3028_v20  ;;  %1437 = vmatprep.subr.bf16.mxu1 %v3031_v21  ;;  %v1001_v21 = vld [vmem:[#allocation3 + $0x10] sm:$0xff] }
 0x130   : > { %1397 = vmatpush1.bf16.msra.mxu0 %v3026_v22  ;;  %1438 = vmatpush1.bf16.msra.mxu1 %v3029_v23  ;;  %v1000_v22 = vld [vmem:[#allocation3 + $0x8] sm:$0xff]  ;;  %v1002_v23 = vld [vmem:[#allocation3 + $0x18] sm:$0xff] }
 0x131   : > { %1398 = vmatprep.subr.bf16.mxu0 %v3034_v24  ;;  %1439 = vmatprep.subr.bf16.mxu1 %v3037_v25 }
 0x134   : > { %1399 = vmatpush1.bf16.msra.mxu0 %v3032_v26  ;;  %1440 = vmatpush1.bf16.msra.mxu1 %v3035_v27 }
 0x135   : > { %1400 = vmatprep.subr.bf16.mxu0 %v3040_v28  ;;  %1441 = vmatprep.subr.bf16.mxu1 %v3043_v29 }
 0x138   : > { %1401 = vmatpush1.bf16.msra.mxu0 %v3038_v30  ;;  %1442 = vmatpush1.bf16.msra.mxu1 %v3041_v31 }
 0x139   : > { %1402 = vmatprep.subr.bf16.mxu0 %v3046_v32  ;;  %1443 = vmatprep.subr.bf16.mxu1 %v3049_v33 }
 0x13c   : > { %1403 = vmatpush1.bf16.msra.mxu0 %v3044_v34  ;;  %1444 = vmatpush1.bf16.msra.mxu1 %v3047_v35 }
 0x13d   : > { %1404 = vmatprep.subr.bf16.mxu0 %v3052_v36  ;;  %1445 = vmatprep.subr.bf16.mxu1 %v3055_v37 }
 0x140   : > { %1405 = vmatpush1.bf16.msra.mxu0 %v3050_v38  ;;  %1446 = vmatpush1.bf16.msra.mxu1 %v3053_v39 }
 0x141   : > { %1406 = vmatprep.subr.bf16.mxu0 %v3058_v40  ;;  %1447 = vmatprep.subr.bf16.mxu1 %v3061_v41 }
 0x144   : > { %1407 = vmatpush1.bf16.msra.mxu0 %v3056_v42  ;;  %1448 = vmatpush1.bf16.msra.mxu1 %v3059_v43 }
 0x145   : > { %1408 = vmatprep.subr.bf16.mxu0 %v3064_v44  ;;  %1449 = vmatprep.subr.bf16.mxu1 %v3067_v45 }
 0x148   : > { %1409 = vmatpush1.bf16.msra.mxu0 %v3062_v46  ;;  %1450 = vmatpush1.bf16.msra.mxu1 %v3065_v47 }
 0x149   : > { %1410 = vmatprep.subr.bf16.mxu0 %v3070_v48  ;;  %1451 = vmatprep.subr.bf16.mxu1 %v3073_v49 }
 0x14c   : > { %1411 = vmatpush1.bf16.msra.mxu0 %v3068_v50  ;;  %1452 = vmatpush1.bf16.msra.mxu1 %v3071_v51 }
 0x14d   : > { %1412 = vmatprep.subr.bf16.mxu0 %v3076_v52  ;;  %1453 = vmatprep.subr.bf16.mxu1 %v3079_v53 }
 0x150   : > { %1413 = vmatpush1.bf16.msra.mxu0 %v3074_v54  ;;  %1454 = vmatpush1.bf16.msra.mxu1 %v3077_v55 }
 0x151   : > { %1414 = vmatprep.subr.bf16.mxu0 %v3082_v56  ;;  %1455 = vmatprep.subr.bf16.mxu1 %v3085_v57 }
 0x154   : > { %1415 = vmatpush1.bf16.msra.mxu0 %v3080_v58  ;;  %1456 = vmatpush1.bf16.msra.mxu1 %v3083_v59 }
 0x155   : > { %1416 = vmatprep.subr.bf16.mxu0 %v3088_v60  ;;  %1457 = vmatprep.subr.bf16.mxu1 %v3091_v61 }
 0x158   : > { %1417 = vmatpush1.bf16.msra.mxu0 %v3086_v62  ;;  %1458 = vmatpush1.bf16.msra.mxu1 %v3089_v63 }
 0x159   : > { %1418 = vmatprep.subr.bf16.mxu0 %v3094_v0  ;;  %1459 = vmatprep.subr.bf16.mxu1 %v3097_v1 }
 0x15c   : > { %1419 = vmatpush1.bf16.msra.mxu0 %v3092_v2  ;;  %1460 = vmatpush1.bf16.msra.mxu1 %v3095_v3 }
 0x15f   : > { %1421 = vmatmul.mubr.bf16.vlgmr.msra.gmra.mrb[4].mxu0 %v3816_v5  ;;  %1462 = vmatmul.mubr.bf16.vlgmr.msra.gmra.mrb[4].mxu1 %v3816_v5  ;;  %v999_v5 = vld [vmem:[#allocation3] sm:$0xff] }
 0x1f2   : > { %v943_v9 = vpop.f32.mrb[0].mxu0  ;;  %v984_v10 = vpop.f32.mrb[0].mxu1 }
 0x1f3   : > { %v991_v11 = vadd.f32 %v943_v9, %v514_v4  ;;  %v993_v12 = vadd.f32 %v984_v10, %v516_v6  ;;  %v945_v13 = vpop.f32.mrb[1].mxu0  ;;  %v986_v14 = vpop.f32.mrb[1].mxu1 }
 0x1f4   : > { %v992_v15 = vadd.f32 %v945_v13, %v515_v7  ;;  %v994_v16 = vadd.f32 %v986_v14, %v517_v8  ;;  %v947_v17 = vpop.f32.mrb[2].mxu0  ;;  %v988_v18 = vpop.f32.mrb[2].mxu1 }
 0x1f5   : > { %995 = vst [vmem:[#allocation2] sm:$0xff] %v991_v11  ;;  %997 = vst [vmem:[#allocation2 + $0x10] sm:$0xff] %v993_v12  ;;  %v948_v19 = vpop.f32.mrb[3].mxu0  ;;  %v989_v20 = vpop.f32.mrb[3].mxu1 }
 0x1f6   : > { %996 = vst [vmem:[#allocation2 + $0x8] sm:$0xff] %v992_v15  ;;  %998 = vst [vmem:[#allocation2 + $0x18] sm:$0xff] %v994_v16 }
 0x232   : > { %v1422_v24 = vpop.f32.mrb[4].mxu0  ;;  %v1463_v25 = vpop.f32.mrb[4].mxu1 }
 0x233   : > { %v1470_v26 = vadd.f32 %v1422_v24, %v999_v5  ;;  %v1472_v27 = vadd.f32 %v1463_v25, %v1001_v21  ;;  %v1424_v28 = vpop.f32.mrb[5].mxu0  ;;  %v1465_v29 = vpop.f32.mrb[5].mxu1 }
 0x234   : > { %v1471_v30 = vadd.f32 %v1424_v28, %v1000_v22  ;;  %v1473_v31 = vadd.f32 %v1465_v29, %v1002_v23  ;;  %v1426_v32 = vpop.f32.mrb[6].mxu0  ;;  %v1467_v33 = vpop.f32.mrb[6].mxu1 }
 0x235   : > { %1474 = vst [vmem:[#allocation3] sm:$0xff] %v1470_v26  ;;  %1476 = vst [vmem:[#allocation3 + $0x10] sm:$0xff] %v1472_v27  ;;  %v1427_v34 = vpop.f32.mrb[7].mxu0  ;;  %v1468_v35 = vpop.f32.mrb[7].mxu1 }
 0x236   : > { %1475 = vst [vmem:[#allocation3 + $0x8] sm:$0xff] %v1471_v30  ;;  %1477 = vst [vmem:[#allocation3 + $0x18] sm:$0xff] %v1473_v31 }
 0x237 PF: > { %s4048_s11 = sld [smem:[#allocation29_spill]] }
 0x23d   : > { %p2667_p7 = scmp.ne.s32.totalorder %s4048_s11, 3 }
 0x23e   : > { %v1488_v36 = vlaneseq (!%p2667_p7)  ;;  %v1482_v38 = vld [vmem:[#allocation2] sm:$0xff] (!%p2667_p7)  ;;  %v1486_v39 = vld [vmem:[#allocation10] sm:$0xf] (!%p2667_p7)  ;;  %v1483_v40 = vld [vmem:[#allocation2 + $0x8] sm:$0xff] (!%p2667_p7) }
 0x23f   : > { %1481 = sbr.rel (%p2667_p7) target bundleno = 590 (0x24e), region = 84  ;;  %v1525_v45 = vld [vmem:[#allocation10 + $0x4] sm:$0xf] (!%p2667_p7)  ;;  %v1485_v47 = vld [vmem:[#allocation2 + $0x18] sm:$0xff] (!%p2667_p7)  ;;  %v1520_v48 = vld [vmem:[#allocation3] sm:$0xff] (!%p2667_p7) }
 0x240   : > { %v1489_v37 = vshrl.u32 (!%p2667_p7), %v1488_v36, 7  ;;  %v1484_v46 = vld [vmem:[#allocation2 + $0x10] sm:$0xff] (!%p2667_p7)  ;;  %v1521_v53 = vld [vmem:[#allocation3 + $0x8] sm:$0xff] (!%p2667_p7)  ;;  %v1523_v55 = vld [vmem:[#allocation3 + $0x18] sm:$0xff] (!%p2667_p7) }
 0x241   : > { %v1522_v54 = vld [vmem:[#allocation3 + $0x10] sm:$0xff] (!%p2667_p7) }
 0x242   : > { %v1490_v41 = vsub.s32 (!%p2667_p7), 0, %v1489_v37  ;;  %v1494_v42 = vsub.s32 (!%p2667_p7), 1, %v1489_v37  ;;  %v1498_v43 = vsub.s32 (!%p2667_p7), 2, %v1489_v37  ;;  %v1502_v44 = vsub.s32 (!%p2667_p7), 3, %v1489_v37 }
 0x244   : > { %v1491_v49 = vrot.slane (!%p2667_p7), %v1486_v39, %v1490_v41  ;;  %v1495_v50 = vrot.slane (!%p2667_p7), %v1486_v39, %v1494_v42  ;;  %v1499_v51 = vrot.slane (!%p2667_p7), %v1486_v39, %v1498_v43  ;;  %v1503_v52 = vrot.slane (!%p2667_p7), %v1486_v39, %v1502_v44 }
 0x245   : > { %v1530_v56 = vrot.slane (!%p2667_p7), %v1525_v45, %v1490_v41  ;;  %v1534_v57 = vrot.slane (!%p2667_p7), %v1525_v45, %v1494_v42  ;;  %v1538_v58 = vrot.slane (!%p2667_p7), %v1525_v45, %v1498_v43  ;;  %v1542_v59 = vrot.slane (!%p2667_p7), %v1525_v45, %v1502_v44 }
 0x246   : > { %v1508_v60 = vadd.f32 %v1491_v49, %v1482_v38  ;;  %v1509_v61 = vadd.f32 %v1495_v50, %v1483_v40  ;;  %v1510_v62 = vadd.f32 %v1499_v51, %v1484_v46  ;;  %v1511_v63 = vadd.f32 %v1503_v52, %v1485_v47 }
 0x247   : > { %v1547_v0 = vadd.f32 %v1530_v56, %v1520_v48  ;;  %v1548_v1 = vadd.f32 %v1534_v57, %v1521_v53  ;;  %v1549_v2 = vadd.f32 %v1538_v58, %v1522_v54  ;;  %v1550_v3 = vadd.f32 %v1542_v59, %v1523_v55 }
 0x248   : > { %v1512_v4 = vmax.f32 %v1508_v60, 0.0  ;;  %v1513_v6 = vmax.f32 %v1509_v61, 0.0  ;;  %v1514_v7 = vmax.f32 %v1510_v62, 0.0  ;;  %v1515_v8 = vmax.f32 %v1511_v63, 0.0 }
 0x249   : > { %v1551_v9 = vmax.f32 %v1547_v0, 0.0  ;;  %v1552_v10 = vmax.f32 %v1548_v1, 0.0  ;;  %v1553_v11 = vmax.f32 %v1549_v2, 0.0  ;;  %v1554_v12 = vmax.f32 %v1550_v3, 0.0 }
 0x24a   : > { %1516 = vst [vmem:[#allocation2] sm:$0xff] %v1512_v4  ;;  %1517 = vst [vmem:[#allocation2 + $0x8] sm:$0xff] %v1513_v6 }
 0x24b   : > { %1518 = vst [vmem:[#allocation2 + $0x10] sm:$0xff] %v1514_v7  ;;  %1519 = vst [vmem:[#allocation2 + $0x18] sm:$0xff] %v1515_v8 }
 0x24c   : > { %1555 = vst [vmem:[#allocation3] sm:$0xff] %v1551_v9  ;;  %1556 = vst [vmem:[#allocation3 + $0x8] sm:$0xff] %v1552_v10 }
 0x24d   : > { %1557 = vst [vmem:[#allocation3 + $0x10] sm:$0xff] %v1553_v11  ;;  %1558 = vst [vmem:[#allocation3 + $0x18] sm:$0xff] %v1554_v12 }
 0x24e PF: > { %s4049_s25 = sld [smem:[#allocation29_spill]] }
 0x254   : > { %p2668_p1 = scmp.lt.s32.totalorder %s4049_s25, 4 }
 0x255   : > { %v3098_v13 = vld [vmem:[%s3732_s24 + $0x4] ss:$16 sps:$4 sm:$0xff] (!%p2668_p1)   ;;  %v3100_v14 = vld [vmem:[%s3732_s24 + $0xc] ss:$16 sps:$4 sm:$0xff] (!%p2668_p1)   ;;  %v3410_v15 = vmov (!%p2668_p1), 0   ;;  %s4050_s16 = sld [smem:[#allocation29_spill]] (!%p2668_p1) }
 0x256   : > { %1562 = sbr.rel (%p2668_p1) target bundleno = 879 (0x36f), region = 88  ;;  %1803 = vmatprep.mubr.bf16.mxu0 (!%p2668_p1), %v3410_v15  ;;  %1844 = vmatprep.mubr.bf16.mxu1 (!%p2668_p1), %v3410_v15  ;;  %v3102_v16 = vld [vmem:[%s3732_s24] ss:$16 sps:$4 sm:$0xff] (!%p2668_p1)   ;;  %v3103_v17 = vld [vmem:[%s3732_s24 + $0x8] ss:$16 sps:$4 sm:$0xff] (!%p2668_p1)  }
 0x257   : > { %1771 = vmatprep.subr.bf16.mxu0 (!%p2668_p1), %v3098_v13  ;;  %1812 = vmatprep.subr.bf16.mxu1 (!%p2668_p1), %v3100_v14  ;;  %v3104_v18 = vld [vmem:[%s3732_s24 + $0x24] ss:$16 sps:$4 sm:$0xff] (!%p2668_p1)   ;;  %v3106_v19 = vld [vmem:[%s3732_s24 + $0x2c] ss:$16 sps:$4 sm:$0xff] (!%p2668_p1)   ;;  %v3108_v20 = vld [vmem:[%s3732_s24 + $0x20] ss:$16 sps:$4 sm:$0xff] (!%p2668_p1)  }
 0x258   : > { %1772 = vmatpush1.bf16.msra.mxu0 (!%p2668_p1), %v3102_v16  ;;  %1813 = vmatpush1.bf16.msra.mxu1 (!%p2668_p1), %v3103_v17  ;;  %v3109_v5 = vld [vmem:[%s3732_s24 + $0x28] ss:$16 sps:$4 sm:$0xff] (!%p2668_p1)   ;;  %v3110_v21 = vld [vmem:[%s3732_s24 + $0x44] ss:$16 sps:$4 sm:$0xff] (!%p2668_p1)   ;;  %v3112_v22 = vld [vmem:[%s3732_s24 + $0x4c] ss:$16 sps:$4 sm:$0xff] (!%p2668_p1)  }
 0x259   : > { %1773 = vmatprep.subr.bf16.mxu0 (!%p2668_p1), %v3104_v18  ;;  %1814 = vmatprep.subr.bf16.mxu1 (!%p2668_p1), %v3106_v19  ;;  %v3114_v23 = vld [vmem:[%s3732_s24 + $0x40] ss:$16 sps:$4 sm:$0xff] (!%p2668_p1)   ;;  %v3115_v24 = vld [vmem:[%s3732_s24 + $0x48] ss:$16 sps:$4 sm:$0xff] (!%p2668_p1)   ;;  %v3116_v25 = vld [vmem:[%s3732_s24 + $0x64] ss:$16 sps:$4 sm:$0xff] (!%p2668_p1)  }
 0x25a   : > { %v3118_v26 = vld [vmem:[%s3732_s24 + $0x6c] ss:$16 sps:$4 sm:$0xff] (!%p2668_p1)   ;;  %v3120_v27 = vld [vmem:[%s3732_s24 + $0x60] ss:$16 sps:$4 sm:$0xff] (!%p2668_p1)   ;;  %v3121_v28 = vld [vmem:[%s3732_s24 + $0x68] ss:$16 sps:$4 sm:$0xff] (!%p2668_p1)  }
 0x25b   : > { %v3122_v29 = vld [vmem:[%s3732_s24 + $0x84] ss:$16 sps:$4 sm:$0xff] (!%p2668_p1)   ;;  %v3124_v30 = vld [vmem:[%s3732_s24 + $0x8c] ss:$16 sps:$4 sm:$0xff] (!%p2668_p1)   ;;  %s2669_s8 = sadd.s32 (!%p2668_p1), 4294967292, %s4050_s16 }
 0x25c   : > { %1774 = vmatpush1.bf16.msra.mxu0 (!%p2668_p1), %v3108_v20  ;;  %1815 = vmatpush1.bf16.msra.mxu1 (!%p2668_p1), %v3109_v5  ;;  %v3126_v31 = vld [vmem:[%s3732_s24 + $0x80] ss:$16 sps:$4 sm:$0xff] (!%p2668_p1)   ;;  %v3127_v32 = vld [vmem:[%s3732_s24 + $0x88] ss:$16 sps:$4 sm:$0xff] (!%p2668_p1)   ;;  %v3128_v33 = vld [vmem:[%s3732_s24 + $0xa4] ss:$16 sps:$4 sm:$0xff] (!%p2668_p1)  }
 0x25d   : > { %1775 = vmatprep.subr.bf16.mxu0 %v3110_v21  ;;  %1816 = vmatprep.subr.bf16.mxu1 %v3112_v22  ;;  %s2670_s12 = sshll.u32 %s2669_s8, 7  ;;  %v3130_v34 = vld [vmem:[%s3732_s24 + $0xac] ss:$16 sps:$4 sm:$0xff]   ;;  %v3132_v35 = vld [vmem:[%s3732_s24 + $0xa0] ss:$16 sps:$4 sm:$0xff]  }
 0x25e   : > { %s1565_s9 = sshra.s32 %s2670_s12, 7  ;;  %v3133_v36 = vld [vmem:[%s3732_s24 + $0xa8] ss:$16 sps:$4 sm:$0xff]   ;;  %v3134_v37 = vld [vmem:[%s3732_s24 + $0xc4] ss:$16 sps:$4 sm:$0xff]  }
 0x25f   : > { %v3136_v38 = vld [vmem:[%s3732_s24 + $0xcc] ss:$16 sps:$4 sm:$0xff]   ;;  %s3915_s20 = sshll.u32 %s1565_s9, 3  ;;  %v3138_v39 = vld [vmem:[%s3732_s24 + $0xc0] ss:$16 sps:$4 sm:$0xff]  }
 0x260   : > { %1776 = vmatpush1.bf16.msra.mxu0 %v3114_v23  ;;  %1817 = vmatpush1.bf16.msra.mxu1 %v3115_v24  ;;  %v3139_v40 = vld [vmem:[%s3732_s24 + $0xc8] ss:$16 sps:$4 sm:$0xff]   ;;  %v3140_v41 = vld [vmem:[%s3732_s24 + $0xe4] ss:$16 sps:$4 sm:$0xff]   ;;  %v3142_v42 = vld [vmem:[%s3732_s24 + $0xec] ss:$16 sps:$4 sm:$0xff]  }
 0x261   : > { %1777 = vmatprep.subr.bf16.mxu0 %v3116_v25  ;;  %1818 = vmatprep.subr.bf16.mxu1 %v3118_v26  ;;  %v3144_v43 = vld [vmem:[%s3732_s24 + $0xe0] ss:$16 sps:$4 sm:$0xff]   ;;  %v3145_v44 = vld [vmem:[%s3732_s24 + $0xe8] ss:$16 sps:$4 sm:$0xff]   ;;  %s1568_s13 = scalar_lea.vmem [#allocation2], %s3915_s20  ;;  %s1572_s19 = scalar_lea.vmem [#allocation3], %s3915_s20 }
 0x262   : > { %v1569_v45 = vld [vmem:[%s1568_s13] sm:$0xff]  ;;  %v3148_v46 = vld [vmem:[%s3732_s24 + $0x104] ss:$16 sps:$4 sm:$0xff]   ;;  %v3146_v49 = vld [vmem:[%s3732_s24 + $0x100] ss:$16 sps:$4 sm:$0xff]  }
 0x263   : > { %v3151_v47 = vld [vmem:[%s3732_s24 + $0x10c] ss:$16 sps:$4 sm:$0xff]   ;;  %v1570_v48 = vpack.c.bf16 %v1569_v45, %v1569_v45  ;;  %v3149_v50 = vld [vmem:[%s3732_s24 + $0x108] ss:$16 sps:$4 sm:$0xff]   ;;  %v3154_v51 = vld [vmem:[%s3732_s24 + $0x124] ss:$16 sps:$4 sm:$0xff]  }
 0x264   : > { %1778 = vmatpush1.bf16.msra.mxu0 %v3120_v27  ;;  %1819 = vmatpush1.bf16.msra.mxu1 %v3121_v28  ;;  %v3157_v52 = vld [vmem:[%s3732_s24 + $0x12c] ss:$16 sps:$4 sm:$0xff]   ;;  %v3152_v53 = vld [vmem:[%s3732_s24 + $0x120] ss:$16 sps:$4 sm:$0xff]   ;;  %v3155_v54 = vld [vmem:[%s3732_s24 + $0x128] ss:$16 sps:$4 sm:$0xff]  }
 0x265   : > { %1779 = vmatprep.subr.bf16.mxu0 %v3122_v29  ;;  %1820 = vmatprep.subr.bf16.mxu1 %v3124_v30  ;;  %v3160_v55 = vld [vmem:[%s3732_s24 + $0x144] ss:$16 sps:$4 sm:$0xff]   ;;  %v3163_v56 = vld [vmem:[%s3732_s24 + $0x14c] ss:$16 sps:$4 sm:$0xff]   ;;  %v3158_v57 = vld [vmem:[%s3732_s24 + $0x140] ss:$16 sps:$4 sm:$0xff]  }
 0x266   : > { %v3161_v58 = vld [vmem:[%s3732_s24 + $0x148] ss:$16 sps:$4 sm:$0xff]   ;;  %v3166_v59 = vld [vmem:[%s3732_s24 + $0x164] ss:$16 sps:$4 sm:$0xff]   ;;  %v3169_v60 = vld [vmem:[%s3732_s24 + $0x16c] ss:$16 sps:$4 sm:$0xff]  }
 0x267   : > { %v3164_v61 = vld [vmem:[%s3732_s24 + $0x160] ss:$16 sps:$4 sm:$0xff]   ;;  %v3167_v62 = vld [vmem:[%s3732_s24 + $0x168] ss:$16 sps:$4 sm:$0xff]   ;;  %v3172_v63 = vld [vmem:[%s3732_s24 + $0x184] ss:$16 sps:$4 sm:$0xff]  }
 0x268   : > { %1780 = vmatpush1.bf16.msra.mxu0 %v3126_v31  ;;  %1821 = vmatpush1.bf16.msra.mxu1 %v3127_v32  ;;  %v3175_v0 = vld [vmem:[%s3732_s24 + $0x18c] ss:$16 sps:$4 sm:$0xff]   ;;  %v3170_v1 = vld [vmem:[%s3732_s24 + $0x180] ss:$16 sps:$4 sm:$0xff]   ;;  %v3173_v2 = vld [vmem:[%s3732_s24 + $0x188] ss:$16 sps:$4 sm:$0xff]  }
 0x269   : > { %1781 = vmatprep.subr.bf16.mxu0 %v3128_v33  ;;  %1822 = vmatprep.subr.bf16.mxu1 %v3130_v34  ;;  %v3178_v3 = vld [vmem:[%s3732_s24 + $0x1a4] ss:$16 sps:$4 sm:$0xff]   ;;  %v3181_v4 = vld [vmem:[%s3732_s24 + $0x1ac] ss:$16 sps:$4 sm:$0xff]   ;;  %v3176_v6 = vld [vmem:[%s3732_s24 + $0x1a0] ss:$16 sps:$4 sm:$0xff]  }
 0x26a   : > { %v3179_v7 = vld [vmem:[%s3732_s24 + $0x1a8] ss:$16 sps:$4 sm:$0xff]   ;;  %v3184_v8 = vld [vmem:[%s3732_s24 + $0x1c4] ss:$16 sps:$4 sm:$0xff]   ;;  %v3187_v9 = vld [vmem:[%s3732_s24 + $0x1cc] ss:$16 sps:$4 sm:$0xff]  }
 0x26b   : > { %v3182_v10 = vld [vmem:[%s3732_s24 + $0x1c0] ss:$16 sps:$4 sm:$0xff]   ;;  %v3185_v11 = vld [vmem:[%s3732_s24 + $0x1c8] ss:$16 sps:$4 sm:$0xff]   ;;  %v3190_v12 = vld [vmem:[%s3732_s24 + $0x1e4] ss:$16 sps:$4 sm:$0xff]  }
 0x26c   : > { %1782 = vmatpush1.bf16.msra.mxu0 %v3132_v35  ;;  %1823 = vmatpush1.bf16.msra.mxu1 %v3133_v36  ;;  %v3193_v13 = vld [vmem:[%s3732_s24 + $0x1ec] ss:$16 sps:$4 sm:$0xff]   ;;  %v3191_v16 = vld [vmem:[%s3732_s24 + $0x1e8] ss:$16 sps:$4 sm:$0xff]   ;;  %v1576_v20 = vld [vmem:[#allocation4 + $0x8] sm:$0xff] }
 0x26d   : > { %1783 = vmatprep.subr.bf16.mxu0 %v3134_v37  ;;  %1824 = vmatprep.subr.bf16.mxu1 %v3136_v38  ;;  %v1573_v14 = vld [vmem:[%s1572_s19] sm:$0xff]  ;;  %v1577_v19 = vld [vmem:[#allocation4 + $0x10] sm:$0xff]  ;;  %v1578_v5 = vld [vmem:[#allocation4 + $0x18] sm:$0xff] }
 0x26e   : > { %v1574_v17 = vpack.c.bf16 %v1573_v14, %v1573_v14  ;;  %v1575_v18 = vld [vmem:[#allocation4] sm:$0xff]  ;;  %v1863_v34 = vld [vmem:[#allocation5 + $0x10] sm:$0xff]  ;;  %v1862_v35 = vld [vmem:[#allocation5 + $0x8] sm:$0xff] }
 0x26f   : > { %v1861_v33 = vld [vmem:[#allocation5] sm:$0xff]  ;;  %v1864_v36 = vld [vmem:[#allocation5 + $0x18] sm:$0xff] }
 0x270   : > { %1784 = vmatpush1.bf16.msra.mxu0 %v3138_v39  ;;  %1825 = vmatpush1.bf16.msra.mxu1 %v3139_v40 }
 0x271   : > { %1785 = vmatprep.subr.bf16.mxu0 %v3140_v41  ;;  %1826 = vmatprep.subr.bf16.mxu1 %v3142_v42 }
 0x274   : > { %1786 = vmatpush1.bf16.msra.mxu0 %v3144_v43  ;;  %1827 = vmatpush1.bf16.msra.mxu1 %v3145_v44 }
 0x275   : > { %2058 = vmatprep.subr.bf16.mxu0 %v3148_v46  ;;  %2099 = vmatprep.subr.bf16.mxu1 %v3151_v47 }
 0x277   : > { %1804 = vmatmul.mubr.bf16.vlgmr.msra.gmra.mrb[0].mxu0 %v1570_v48  ;;  %1845 = vmatmul.mubr.bf16.vlgmr.msra.gmra.mrb[0].mxu1 %v1570_v48 }
 0x278   : > { %2059 = vmatpush1.bf16.msra.mxu0 %v3146_v49  ;;  %2100 = vmatpush1.bf16.msra.mxu1 %v3149_v50 }
 0x279   : > { %2060 = vmatprep.subr.bf16.mxu0 %v3154_v51  ;;  %2101 = vmatprep.subr.bf16.mxu1 %v3157_v52 }
 0x27a   : > { %2090 = vmatprep.mubr.bf16.mxu0 %v3410_v15  ;;  %2131 = vmatprep.mubr.bf16.mxu1 %v3410_v15  ;;  %v3188_v15 = vld [vmem:[%s3732_s24 + $0x1e0] ss:$16 sps:$4 sm:$0xff]  }
 0x27c   : > { %2061 = vmatpush1.bf16.msra.mxu0 %v3152_v53  ;;  %2102 = vmatpush1.bf16.msra.mxu1 %v3155_v54 }
 0x27d   : > { %2062 = vmatprep.subr.bf16.mxu0 %v3160_v55  ;;  %2103 = vmatprep.subr.bf16.mxu1 %v3163_v56 }
 0x280   : > { %2063 = vmatpush1.bf16.msra.mxu0 %v3158_v57  ;;  %2104 = vmatpush1.bf16.msra.mxu1 %v3161_v58 }
 0x281   : > { %2064 = vmatprep.subr.bf16.mxu0 %v3166_v59  ;;  %2105 = vmatprep.subr.bf16.mxu1 %v3169_v60 }
 0x284   : > { %2065 = vmatpush1.bf16.msra.mxu0 %v3164_v61  ;;  %2106 = vmatpush1.bf16.msra.mxu1 %v3167_v62 }
 0x285   : > { %2066 = vmatprep.subr.bf16.mxu0 %v3172_v63  ;;  %2107 = vmatprep.subr.bf16.mxu1 %v3175_v0 }
 0x288   : > { %2067 = vmatpush1.bf16.msra.mxu0 %v3170_v1  ;;  %2108 = vmatpush1.bf16.msra.mxu1 %v3173_v2 }
 0x289   : > { %2068 = vmatprep.subr.bf16.mxu0 %v3178_v3  ;;  %2109 = vmatprep.subr.bf16.mxu1 %v3181_v4 }
 0x28c   : > { %2069 = vmatpush1.bf16.msra.mxu0 %v3176_v6  ;;  %2110 = vmatpush1.bf16.msra.mxu1 %v3179_v7 }
 0x28d   : > { %2070 = vmatprep.subr.bf16.mxu0 %v3184_v8  ;;  %2111 = vmatprep.subr.bf16.mxu1 %v3187_v9 }
 0x290   : > { %2071 = vmatpush1.bf16.msra.mxu0 %v3182_v10  ;;  %2112 = vmatpush1.bf16.msra.mxu1 %v3185_v11 }
 0x291   : > { %2072 = vmatprep.subr.bf16.mxu0 %v3190_v12  ;;  %2113 = vmatprep.subr.bf16.mxu1 %v3193_v13 }
 0x294   : > { %2073 = vmatpush1.bf16.msra.mxu0 %v3188_v15  ;;  %2114 = vmatpush1.bf16.msra.mxu1 %v3191_v16 }
 0x297   : > { %2091 = vmatmul.mubr.bf16.vlgmr.msra.gmra.mrb[4].mxu0 %v1574_v17  ;;  %2132 = vmatmul.mubr.bf16.vlgmr.msra.gmra.mrb[4].mxu1 %v1574_v17 }
 0x34a   : > { %v1805_v21 = vpop.f32.mrb[0].mxu0  ;;  %v1846_v22 = vpop.f32.mrb[0].mxu1 }
 0x34b   : > { %v1853_v23 = vadd.f32 %v1805_v21, %v1575_v18  ;;  %v1855_v24 = vadd.f32 %v1846_v22, %v1577_v19  ;;  %v1807_v25 = vpop.f32.mrb[1].mxu0  ;;  %v1848_v26 = vpop.f32.mrb[1].mxu1 }
 0x34c   : > { %v1854_v27 = vadd.f32 %v1807_v25, %v1576_v20  ;;  %v1856_v28 = vadd.f32 %v1848_v26, %v1578_v5  ;;  %v1809_v29 = vpop.f32.mrb[2].mxu0  ;;  %v1850_v30 = vpop.f32.mrb[2].mxu1 }
 0x34d   : > { %1857 = vst [vmem:[#allocation4] sm:$0xff] %v1853_v23  ;;  %1859 = vst [vmem:[#allocation4 + $0x10] sm:$0xff] %v1855_v24  ;;  %v1810_v31 = vpop.f32.mrb[3].mxu0  ;;  %v1851_v32 = vpop.f32.mrb[3].mxu1 }
 0x34e   : > { %1858 = vst [vmem:[#allocation4 + $0x8] sm:$0xff] %v1854_v27  ;;  %1860 = vst [vmem:[#allocation4 + $0x18] sm:$0xff] %v1856_v28 }
 0x36a   : > { %v2092_v37 = vpop.f32.mrb[4].mxu0  ;;  %v2133_v38 = vpop.f32.mrb[4].mxu1 }
 0x36b   : > { %v2140_v39 = vadd.f32 %v2092_v37, %v1861_v33  ;;  %v2142_v40 = vadd.f32 %v2133_v38, %v1863_v34  ;;  %v2094_v41 = vpop.f32.mrb[5].mxu0  ;;  %v2135_v42 = vpop.f32.mrb[5].mxu1 }
 0x36c   : > { %v2141_v43 = vadd.f32 %v2094_v41, %v1862_v35  ;;  %v2143_v44 = vadd.f32 %v2135_v42, %v1864_v36  ;;  %v2096_v45 = vpop.f32.mrb[6].mxu0  ;;  %v2137_v46 = vpop.f32.mrb[6].mxu1 }
 0x36d   : > { %2144 = vst [vmem:[#allocation5] sm:$0xff] %v2140_v39  ;;  %2146 = vst [vmem:[#allocation5 + $0x10] sm:$0xff] %v2142_v40  ;;  %v2097_v47 = vpop.f32.mrb[7].mxu0  ;;  %v2138_v48 = vpop.f32.mrb[7].mxu1 }
 0x36e   : > { %2145 = vst [vmem:[#allocation5 + $0x8] sm:$0xff] %v2141_v43  ;;  %2147 = vst [vmem:[#allocation5 + $0x18] sm:$0xff] %v2143_v44 }
 0x36f PF: > { %s4051_s18 = sld [smem:[#allocation29_spill]] }
 0x375   : > { %p2769_p8 = scmp.ne.s32.totalorder %s4051_s18, 7 }
 0x376   : > { %v2158_v49 = vlaneseq (!%p2769_p8)  ;;  %v2152_v51 = vld [vmem:[#allocation4] sm:$0xff] (!%p2769_p8)  ;;  %v2156_v52 = vld [vmem:[#allocation13] sm:$0xf] (!%p2769_p8)  ;;  %v2153_v58 = vld [vmem:[#allocation4 + $0x8] sm:$0xff] (!%p2769_p8)  ;;  %s4052_s21 = sld [smem:[#allocation35_spill]] (!%p2769_p8)  ;;  %vm2321_vm1 = vcmask (!%p2769_p8), 15360  }
 0x377   : > { %2151 = sbr.rel (%p2769_p8) target bundleno = 1210 (0x4ba), region = 92  ;;  %v2221_v57 = vld [vmem:[#allocation14] sm:$0xf] (!%p2769_p8)  ;;  %v2154_v59 = vld [vmem:[#allocation4 + $0x10] sm:$0xff] (!%p2769_p8)  ;;  %v2155_v60 = vld [vmem:[#allocation4 + $0x18] sm:$0xff] (!%p2769_p8)  ;;  %s4053_s6 = sld [smem:[#allocation36_spill]] (!%p2769_p8) }
 0x378   : > { %v2159_v50 = vshrl.u32 (!%p2769_p8), %v2158_v49, 7  ;;  %v2191_v1 = vld [vmem:[#allocation13 + $0x4] sm:$0xf] (!%p2769_p8)  ;;  %v2186_v7 = vld [vmem:[#allocation5] sm:$0xff] (!%p2769_p8)  ;;  %v2187_v12 = vld [vmem:[#allocation5 + $0x8] sm:$0xff] (!%p2769_p8) }
 0x379   : > { %v2188_v13 = vld [vmem:[#allocation5 + $0x10] sm:$0xff] (!%p2769_p8)  ;;  %v2189_v14 = vld [vmem:[#allocation5 + $0x18] sm:$0xff] (!%p2769_p8)  ;;  %v2261_v26 = vld [vmem:[#allocation14 + $0x4] sm:$0xf] (!%p2769_p8) }
 0x37a   : > { %v2160_v53 = vsub.s32 (!%p2769_p8), 0, %v2159_v50  ;;  %v2164_v54 = vsub.s32 (!%p2769_p8), 1, %v2159_v50  ;;  %v2168_v55 = vsub.s32 (!%p2769_p8), 2, %v2159_v50  ;;  %v2172_v56 = vsub.s32 (!%p2769_p8), 3, %v2159_v50 }
 0x37b   : > { %v3411_v50 = vmov (!%p2769_p8), 0  }
 0x37c   : > { %v2161_v61 = vrot.slane (!%p2769_p8), %v2156_v52, %v2160_v53  ;;  %v2165_v62 = vrot.slane (!%p2769_p8), %v2156_v52, %v2164_v54  ;;  %v2169_v63 = vrot.slane (!%p2769_p8), %v2156_v52, %v2168_v55  ;;  %v2173_v0 = vrot.slane (!%p2769_p8), %v2156_v52, %v2172_v56  ;;  %3194 = vset.pattern.permute.xlu1 (!%p2769_p8), %v3411_v50 }
 0x37d   : > { %v2226_v2 = vrot.slane (!%p2769_p8), %v2221_v57, %v2160_v53  ;;  %v2230_v3 = vrot.slane (!%p2769_p8), %v2221_v57, %v2164_v54  ;;  %v2234_v4 = vrot.slane (!%p2769_p8), %v2221_v57, %v2168_v55  ;;  %v2238_v6 = vrot.slane (!%p2769_p8), %v2221_v57, %v2172_v56  ;;  %3195 = vset.pattern.permute.xlu0 (!%p2769_p8), %v3411_v50 }
 0x37e   : > { %v2178_v8 = vadd.f32 %v2161_v61, %v2152_v51  ;;  %v2179_v9 = vadd.f32 %v2165_v62, %v2153_v58  ;;  %v2180_v10 = vadd.f32 %v2169_v63, %v2154_v59  ;;  %v2181_v11 = vadd.f32 %v2173_v0, %v2155_v60  ;;  %v2770_v51 = vld [vmem:[%s4052_s21] ss:$0 sm:$0xff] }
 0x37f   : > { %v2196_v15 = vrot.slane %v2191_v1, %v2160_v53  ;;  %v2200_v16 = vrot.slane %v2191_v1, %v2164_v54  ;;  %v2204_v17 = vrot.slane %v2191_v1, %v2168_v55  ;;  %v2208_v18 = vrot.slane %v2191_v1, %v2172_v56 }
 0x380   : > { %v2182_v19 = vmax.f32 %v2178_v8, 0.0  ;;  %v2183_v20 = vmax.f32 %v2179_v9, 0.0  ;;  %v2184_v5 = vmax.f32 %v2180_v10, 0.0  ;;  %v2185_v21 = vmax.f32 %v2181_v11, 0.0 }
 0x381   : > { %v2213_v22 = vadd.f32 %v2196_v15, %v2186_v7  ;;  %v2214_v23 = vadd.f32 %v2200_v16, %v2187_v12  ;;  %v2215_v24 = vadd.f32 %v2204_v17, %v2188_v13  ;;  %v2216_v25 = vadd.f32 %v2208_v18, %v2189_v14 }
 0x382   : > { %v2243_v27 = vmul.f32 %v2226_v2, %v2182_v19  ;;  %v2244_v28 = vmul.f32 %v2230_v3, %v2183_v20  ;;  %v2245_v29 = vmul.f32 %v2234_v4, %v2184_v5  ;;  %v2246_v30 = vmul.f32 %v2238_v6, %v2185_v21 }
 0x383   : > { %v2217_v31 = vmax.f32 %v2213_v22, 0.0  ;;  %v2218_v32 = vmax.f32 %v2214_v23, 0.0  ;;  %v2219_v33 = vmax.f32 %v2215_v24, 0.0  ;;  %v2220_v34 = vmax.f32 %v2216_v25, 0.0 }
 0x384   : > { %v2247_v35 = vadd.f32 %v2244_v28, %v2243_v27  ;;  %v2266_v36 = vrot.slane %v2261_v26, %v2160_v53  ;;  %v2270_v37 = vrot.slane %v2261_v26, %v2164_v54  ;;  %v2274_v38 = vrot.slane %v2261_v26, %v2168_v55  ;;  %v2772_v54 = vld [vmem:[%s4052_s21 + $0x1] ss:$0 sm:$0xff] }
 0x385   : > { %v2278_v39 = vrot.slane %v2261_v26, %v2172_v56  ;;  %v2302_v57 = vand.u32 127, %v2158_v49 }
 0x386   : > { %v2248_v40 = vadd.f32 %v2247_v35, %v2245_v29  ;;  %v2283_v41 = vmul.f32 %v2266_v36, %v2217_v31  ;;  %v2284_v42 = vmul.f32 %v2270_v37, %v2218_v32  ;;  %v2285_v43 = vmul.f32 %v2274_v38, %v2219_v33 }
 0x387   : > { %v2286_v45 = vmul.f32 %v2278_v39, %v2220_v34  ;;  %vm2303_vm0 = vcmp.eq.s32.totalorder %v2302_v57, 0 }
 0x388   : > { %v2249_v44 = vadd.f32 %v2248_v40, %v2246_v30  ;;  %v2287_v46 = vadd.f32 %v2284_v42, %v2283_v41 }
 0x38a   : > { %2250 = vadd.xlane.f32.xlu0 %v2249_v44  ;;  %v2288_v47 = vadd.f32 %v2287_v46, %v2285_v43 }
 0x38c   : > { %v2289_v48 = vadd.f32 %v2288_v47, %v2286_v45 }
 0x38e   : > { %2290 = vadd.xlane.f32.xlu0 %v2289_v48 }
 0x417   : > { %v2251_v52 = vpop.xlane.xlu0 %2250 }
 0x418   : > { %v2259_v53 = vadd.f32 %v2770_v51, %v2251_v52 }
 0x41a   : > { %2306 = vperm.xlu1 %3194, %v2259_v53  }
 0x41b   : > { %v2291_v55 = vpop.xlane.xlu0 %2290 }
 0x41c   : > { %v2300_v56 = vadd.f32 %v2772_v54, %v2291_v55 }
 0x41e   : > { %2311 = vperm.xlu1 %3194, %v2300_v56  }
 0x499   : > { %v2307_v58 = vpop.permute.xlu1 %2306 }
 0x49d   : > { %v2312_v59 = vpop.permute.xlu1 %2311 }
 0x49e   : > { %v2314_v60 = vsel %vm2303_vm0, %v2307_v58, %v2312_v59 }
 0x49f   : > { %v2773_v61 = vmul.f32 -1.442695, %v2314_v60 }
 0x4a1   : > { %3196 = vpow2.f32 %v2773_v61 }
 0x4ab   : > { %v3197_v62 = vpop.eup %3196 }
 0x4ac   : > { %v2318_v63 = vadd.f32 1.0, %v3197_v62 }
 0x4ae   : > { %3198 = vrcp.f32 %v2318_v63 }
 0x4b8   : > { %v3199_v0 = vpop.eup %3198 }
 0x4b9   : > { %2322 = vst.msk [vmem:[%s4053_s6] sm:$0xff] %vm2321_vm1, %v3199_v0 }
 0x4ba PF: > { %s4054_s30 = sld [smem:[#allocation30_spill]]  ;;  %s4055_s24 = sld [smem:[#allocation28_spill]] }
 0x4bb   : > { %s4056_s14 = sld [smem:[#allocation33_spill]]  ;;  %s4057_s10 = sld [smem:[#allocation31_spill]] }
 0x4bc   : > { %s4058_s25 = smov %s3374_s26  ;;  %s4060_s27 = smov %s3382_s28 }
 0x4bd   : > { %s4061_s28 = smov %s3386_s29 }
 0x4c0   : > { %p24_p12 = scmp.ge.s32.totalorder %s4054_s30, 10  }
 0x4c1   : > { %s4059_s26 = smov %s4056_s14  ;;  %s4062_s29 = smov %s4057_s10 }
 0x4c2   :  { %26 = sbr.rel (!%p24_p12) target bundleno = 14 (0xe), region = 160 }
 0x4c9   :  { %2334 = vsyncpa [#allocation7], 1 }
 0x4ca   :  { %2336 = vsyncpa [#allocation7 + $0x1], 1 }
 0x4cb   :  { %2337 = vsyncpa [#allocation9], 1 }
 0x4cc   :  { %2339 = vsyncpa [#allocation9 + $0x1], 1 }
 0x4cd   :  { %2340 = vsyncpa [#allocation12], 1 }
 0x4ce   :  { %2342 = vsyncpa [#allocation12 + $0x1], 1 }
 0x4cf   :  { %2343 = vsyncpa [#allocation15], 1 }

</bundles_post_ra>
